<compile_context>
chip_gen: v7x
topology: tpu7x:2x2x1
jax: 0.10.0
libtpu: 0.0.40
codegen_flags: <defaults>
</compile_context>

<pallas_src>
import math
import jax
import jax.numpy as jnp
from jax.experimental import pallas as pl
from jax.experimental.pallas import tpu as pltpu


def make_mhsa_kernel(batch_tile, seq_len, embed_dim, num_heads):
    head_dim = embed_dim // num_heads
    rows = batch_tile * seq_len

    def mhsa_kernel(x_ref, wqkv_ref, bqkv_ref, wo_ref, bo_ref, o_ref, ctx_ref):
        C = embed_dim
        # x tile: (Bt, T, C). Flatten rows for the fused projection matmul.
        x = x_ref[...].reshape(rows, C).astype(jnp.bfloat16)

        # Single fused QKV projection on the MXU (bf16 in, f32 accumulate).
        # The 1/sqrt(head_dim) attention scale is already folded into wq / bq.
        qkv = jnp.dot(x, wqkv_ref[...],
                      preferred_element_type=jnp.float32) + bqkv_ref[...]
        # One-time bf16 cast; everything downstream slices this bf16 tensor.
        qkv = qkv.astype(jnp.bfloat16).reshape(batch_tile, seq_len, 3 * C)

        q = qkv[:, :, :C]
        k = qkv[:, :, C:2 * C]
        v = qkv[:, :, 2 * C:]

        # TODO(synk): flash-style KV tiling (online softmax) + head-major layout
        # before targeting T >~ 1K; the unrolled head loop materializes full
        # (Bt, T, T) score blocks and slices the lane dim at head offsets.
        for h in range(num_heads):
            lo = h * head_dim
            hi = lo + head_dim
            qh = q[:, :, lo:hi]                                  # (Bt, T, D) bf16
            kh = k[:, :, lo:hi]
            vh = v[:, :, lo:hi]

            s = jnp.einsum("btd,bsd->bts", qh, kh,
                           preferred_element_type=jnp.float32)   # (Bt, T, T) f32
            s = s - jnp.max(s, axis=-1, keepdims=True)
            p = jnp.exp(s)
            denom = jnp.sum(p, axis=-1, keepdims=True)           # (Bt, T, 1)

            # Unnormalized context; normalization is deferred to the (T, D) ctx.
            ctx = jnp.einsum("bts,bsd->btd", p.astype(jnp.bfloat16), vh,
                             preferred_element_type=jnp.float32)  # (Bt, T, D)
            ctx = ctx * pl.reciprocal(denom, approx=True)

            # Stage the head's context at its lane offset; one full-K output
            # projection happens after the loop.
            ctx_ref[:, lo:hi] = ctx.reshape(rows, head_dim).astype(jnp.bfloat16)

        # Single full-contraction output projection (+ bias, added once).
        out = jnp.dot(ctx_ref[...], wo_ref[...],
                      preferred_element_type=jnp.float32) + bo_ref[...]
        o_ref[...] = out.reshape(batch_tile, seq_len, C).astype(o_ref.dtype)

    return mhsa_kernel


def _tpu_defaults():
    """Return (vmem_limit_bytes or None, vmem_budget_bytes, min_grid_steps)."""
    kind = ""
    try:
        kind = jax.devices()[0].device_kind.lower()
    except Exception:
        pass
    if "v7" in kind or "7x" in kind:
        # v7x: 64 MiB physical VMEM, two TensorCores -> keep >= 2 grid steps.
        return 56 << 20, 44 << 20, 2
    if "v6" in kind or "6e" in kind:
        # v6e: 128 MiB physical, single TC -> few, large grid steps.
        return 100 << 20, 80 << 20, 1
    if "v5" in kind:
        # v5e/v5p: 128 MiB physical but only 16 MiB default scoped -> raise it.
        return 100 << 20, 80 << 20, 1
    # Unknown generation: stay under default scoped limits, don't raise them.
    return None, 12 << 20, 1


def _vmem_working_set_bytes(bt, T, C):
    """Conservative per-grid-step VMEM estimate for the kernel above."""
    rows = bt * T
    io = 2 * rows * C * 4 * 2                        # double-buffered x + out tiles (f32)
    weights = (3 * C * C + C * C) * 2 + 4 * C * 4    # bf16 weights + f32 biases (single buf)
    qkv = rows * 3 * C * (4 + 2)                     # f32 projection result + bf16 copy
    scores = 4 * bt * T * T * 4                      # a few (Bt,T,T) f32 blocks live
    ctx = rows * C * 2 + rows * C * 4                # bf16 ctx scratch + f32 accumulator
    return io + weights + qkv + scores + ctx


def _choose_batch_tile(B, T, C, vmem_budget, min_grid_steps):
    bt = B
    # Keep at least `min_grid_steps` grid steps (feeds both v7x TensorCores).
    while bt > 1 and pl.cdiv(B, bt) < min_grid_steps:
        bt -= 1
    # Shrink until the tile divides B and the working set fits the VMEM budget.
    while bt > 1 and (B % bt != 0
                      or _vmem_working_set_bytes(bt, T, C) > vmem_budget):
        bt -= 1
    return max(bt, 1)


def _build_call(x_shape, dtype, batch_tile, num_heads, single_buffer_weights,
                vmem_limit_bytes, cost_estimate):
    B, T, C = x_shape
    rows = batch_tile * T
    kernel = make_mhsa_kernel(batch_tile, T, C, num_heads)

    def const_spec(shape):
        idx = (lambda b: (0,)) if len(shape) == 1 else (lambda b: (0,) * len(shape))
        if single_buffer_weights:
            # Constant index_map -> fetched once; single-buffer to save VMEM.
            return pl.BlockSpec(shape, idx, pipeline_mode=pl.Buffered(1))
        return pl.BlockSpec(shape, idx)

    compiler_kwargs = dict(dimension_semantics=("parallel",))
    if vmem_limit_bytes is not None:
        compiler_kwargs["vmem_limit_bytes"] = int(vmem_limit_bytes)

    return pl.pallas_call(
        kernel,
        out_shape=jax.ShapeDtypeStruct((B, T, C), dtype),
        grid_spec=pltpu.PrefetchScalarGridSpec(
            num_scalar_prefetch=0,
            grid=(B // batch_tile,),
            in_specs=[
                pl.BlockSpec((batch_tile, T, C), lambda b: (b, 0, 0)),  # x
                const_spec((C, 3 * C)),                                  # wqkv
                const_spec((1, 3 * C)),                                  # bqkv
                const_spec((C, C)),                                      # wo
                const_spec((1, C)),                                      # bo
            ],
            out_specs=pl.BlockSpec((batch_tile, T, C), lambda b: (b, 0, 0)),
            scratch_shapes=[pltpu.VMEM((rows, C), jnp.bfloat16)],        # ctx stage
        ),
        compiler_params=pltpu.CompilerParams(**compiler_kwargs),
        cost_estimate=cost_estimate,
    )


def multi_head_self_attention(x, params, num_heads, batch_tile=None):
    """x: (B, T, C) float32. params: dict of (C, C) weights and (1, C) biases
    stored transposed relative to torch.nn.Linear, i.e. y = x @ W + b."""
    B, T, C = x.shape
    assert C % num_heads == 0
    head_dim = C // num_heads
    scale = 1.0 / math.sqrt(head_dim)

    # Fold the attention scale into the q projection (no in-kernel scale mul),
    # and fuse Q/K/V weights into one bf16 (C, 3C) matmul operand.
    wqkv = jnp.concatenate([params["wq"] * scale, params["wk"], params["wv"]],
                           axis=1).astype(jnp.bfloat16)
    bqkv = jnp.concatenate([params["bq"] * scale, params["bk"], params["bv"]],
                           axis=1).astype(jnp.float32)
    wo = params["wo"].astype(jnp.bfloat16)
    bo = params["bo"].astype(jnp.float32)

    vmem_limit, vmem_budget, min_steps = _tpu_defaults()
    if batch_tile is None:
        batch_tile = _choose_batch_tile(B, T, C, vmem_budget, min_steps)
    assert B % batch_tile == 0

    # Advisory cost estimate so XLA schedules around the custom call sensibly.
    flops = (2 * B * T * C * (3 * C)      # fused QKV projection
             + 4 * B * T * T * C          # QK^T + PV across all heads
             + 2 * B * T * C * C)         # output projection
    cost = pl.CostEstimate(
        flops=flops,
        transcendentals=B * num_heads * T * T,
        bytes_accessed=(2 * B * T * C * 4            # x in + out
                        + 4 * C * C * 2              # bf16 weights
                        + 4 * C * 4),                # f32 biases
    )

    args = (x, wqkv, bqkv, wo, bo)
    # Try single-buffered weights first; fall back to default double-buffering
    # if this JAX build rejects pipeline_mode=pl.Buffered(1).
    for single_buffer_weights in (True, False):
        try:
            call = _build_call(x.shape, x.dtype, batch_tile, num_heads,
                               single_buffer_weights, vmem_limit, cost)
            return call(*args)
        except Exception:
            if not single_buffer_weights:
                raise


def reference_mhsa(x, params, num_heads):
    """Pure-JAX f32 reference mirroring the PyTorch forward (mask=None, dropout=0)."""
    B, T, C = x.shape
    D = C // num_heads
    q = x @ params["wq"] + params["bq"]
    k = x @ params["wk"] + params["bk"]
    v = x @ params["wv"] + params["bv"]
    q = q.reshape(B, T, num_heads, D).transpose(0, 2, 1, 3)
    k = k.reshape(B, T, num_heads, D).transpose(0, 2, 1, 3)
    v = v.reshape(B, T, num_heads, D).transpose(0, 2, 1, 3)
    scores = jnp.einsum("bhqd,bhkd->bhqk", q, k) / math.sqrt(D)
    attn = jax.nn.softmax(scores, axis=-1)
    ctx = jnp.einsum("bhqk,bhkd->bhqd", attn, v)
    ctx = ctx.transpose(0, 2, 1, 3).reshape(B, T, C)
    return ctx @ params["wo"] + params["bo"]


def init_params(key, embed_dim):
    # Deterministic init (uniform, roughly matching nn.Linear's kaiming-uniform scale).
    ks = jax.random.split(key, 8)
    bound = 1.0 / math.sqrt(embed_dim)

    def w(k):
        return jax.random.uniform(k, (embed_dim, embed_dim), jnp.float32, -bound, bound)

    def b(k):
        return jax.random.uniform(k, (1, embed_dim), jnp.float32, -bound, bound)

    return {
        "wq": w(ks[0]), "bq": b(ks[1]),
        "wk": w(ks[2]), "bk": b(ks[3]),
        "wv": w(ks[4]), "bv": b(ks[5]),
        "wo": w(ks[6]), "bo": b(ks[7]),
    }


if __name__ == "__main__":
    B, T, C = 2, 8, 32
    num_heads = 4

    key = jax.random.PRNGKey(0)
    kx, kp = jax.random.split(key)
    x = jax.random.normal(kx, (B, T, C), jnp.float32)
    params = init_params(kp, C)

    out = multi_head_self_attention(x, params, num_heads)
    out = jax.block_until_ready(out)

    ref = reference_mhsa(x, params, num_heads)
    assert out.shape == (B, T, C)
    err = float(jnp.max(jnp.abs(out - ref)))
    # bf16 matmul operands + approx reciprocal vs f32 reference -> ~1e-2 level error.
    assert err < 5e-2, f"mismatch vs reference: max abs err {err}"

    print("KERNEL_OK")
</pallas_src>

<mosaic_0001>
module attributes {stable_mosaic.version = 11 : i64} {
  func.func @mhsa_kernel(%arg0: i32, %arg1: memref<2x8x32xf32, #tpu.memory_space<vmem>>, %arg2: memref<32x96xbf16, #tpu.memory_space<vmem>>, %arg3: memref<1x96xf32, #tpu.memory_space<vmem>>, %arg4: memref<32x32xbf16, #tpu.memory_space<vmem>>, %arg5: memref<1x32xf32, #tpu.memory_space<vmem>>, %arg6: memref<2x8x32xf32, #tpu.memory_space<vmem>>, %arg7: memref<16x32xbf16, #tpu.memory_space<vmem>>) attributes {dimension_semantics = [#tpu.dimension_semantics<parallel>], iteration_bounds = array<i64: 1>, scalar_prefetch = 0 : i64, scratch_operands = 1 : i64, tpu.core_type = #tpu.core_type<tc>, window_params = [{transform_indices = @transform_0, window_bounds = array<i64: 2, 8, 32>}, {pipeline_mode = #tpu.pipeline_mode<synchronous>, transform_indices = @transform_1, window_bounds = array<i64: 32, 96>}, {pipeline_mode = #tpu.pipeline_mode<synchronous>, transform_indices = @transform_2, window_bounds = array<i64: 1, 96>}, {pipeline_mode = #tpu.pipeline_mode<synchronous>, transform_indices = @transform_3, window_bounds = array<i64: 32, 32>}, {pipeline_mode = #tpu.pipeline_mode<synchronous>, transform_indices = @transform_4, window_bounds = array<i64: 1, 32>}, {transform_indices = @transform_5, window_bounds = array<i64: 2, 8, 32>}]} {
    %c0 = arith.constant 0 : index
    %c0_0 = arith.constant 0 : index
    %c0_1 = arith.constant 0 : index
    %0 = vector.load %arg1[%c0, %c0_0, %c0_1] : memref<2x8x32xf32, #tpu.memory_space<vmem>>, vector<2x8x32xf32>
    %1 = vector.shape_cast %0 : vector<2x8x32xf32> to vector<16x32xf32>
    %2 = arith.truncf %1 : vector<16x32xf32> to vector<16x32xbf16>
    %c0_2 = arith.constant 0 : index
    %c0_3 = arith.constant 0 : index
    %3 = vector.load %arg2[%c0_2, %c0_3] : memref<32x96xbf16, #tpu.memory_space<vmem>>, vector<32x96xbf16>
    %cst = arith.constant dense<0.000000e+00> : vector<16x96xf32>
    %4 = tpu.matmul %2, %3, %cst {dimension_numbers = #tpu.dot_dimension_numbers<[1], [0], [0], [1], [0, 0, 1, 1], [], []>} : vector<16x32xbf16>, vector<32x96xbf16>, vector<16x96xf32> -> vector<16x96xf32>
    %c0_4 = arith.constant 0 : index
    %c0_5 = arith.constant 0 : index
    %5 = vector.load %arg3[%c0_4, %c0_5] : memref<1x96xf32, #tpu.memory_space<vmem>>, vector<1x96xf32>
    %6 = vector.broadcast %5 : vector<1x96xf32> to vector<16x96xf32>
    %7 = arith.addf %4, %6 : vector<16x96xf32>
    %8 = arith.truncf %7 : vector<16x96xf32> to vector<16x96xbf16>
    %9 = vector.shape_cast %8 : vector<16x96xbf16> to vector<2x8x96xbf16>
    %10 = vector.extract_strided_slice %9 {offsets = [0, 0, 0], sizes = [2, 8, 32], strides = [1, 1, 1]} : vector<2x8x96xbf16> to vector<2x8x32xbf16>
    %11 = vector.extract_strided_slice %9 {offsets = [0, 0, 32], sizes = [2, 8, 32], strides = [1, 1, 1]} : vector<2x8x96xbf16> to vector<2x8x32xbf16>
    %12 = vector.extract_strided_slice %9 {offsets = [0, 0, 64], sizes = [2, 8, 32], strides = [1, 1, 1]} : vector<2x8x96xbf16> to vector<2x8x32xbf16>
    %13 = vector.extract_strided_slice %10 {offsets = [0, 0, 0], sizes = [2, 8, 8], strides = [1, 1, 1]} : vector<2x8x32xbf16> to vector<2x8x8xbf16>
    %14 = vector.extract_strided_slice %11 {offsets = [0, 0, 0], sizes = [2, 8, 8], strides = [1, 1, 1]} : vector<2x8x32xbf16> to vector<2x8x8xbf16>
    %15 = vector.extract_strided_slice %12 {offsets = [0, 0, 0], sizes = [2, 8, 8], strides = [1, 1, 1]} : vector<2x8x32xbf16> to vector<2x8x8xbf16>
    "tpu.trace_start"() <{level = 10 : i32, message = "btd,bsd->bts"}> : () -> ()
    %cst_6 = arith.constant dense<0.000000e+00> : vector<2x8x8xf32>
    %16 = tpu.matmul %13, %14, %cst_6 {dimension_numbers = #tpu.dot_dimension_numbers<[2], [2], [1], [1], [0, 0, 0, 1, 1, 1], [0], [0]>} : vector<2x8x8xbf16>, vector<2x8x8xbf16>, vector<2x8x8xf32> -> vector<2x8x8xf32>
    "tpu.trace_stop"() : () -> ()
    %cst_7 = arith.constant dense<0xFF800000> : vector<2x8xf32>
    %17 = vector.multi_reduction <maximumf>, %16, %cst_7 [2] : vector<2x8x8xf32> to vector<2x8xf32>
    %18 = vector.shape_cast %17 : vector<2x8xf32> to vector<2x8x1xf32>
    %19 = vector.broadcast %18 : vector<2x8x1xf32> to vector<2x8x8xf32>
    %20 = arith.subf %16, %19 : vector<2x8x8xf32>
    %21 = math.exp %20 : vector<2x8x8xf32>
    %cst_8 = arith.constant dense<0.000000e+00> : vector<2x8xf32>
    %22 = vector.multi_reduction <add>, %21, %cst_8 [2] : vector<2x8x8xf32> to vector<2x8xf32>
    %23 = vector.shape_cast %22 : vector<2x8xf32> to vector<2x8x1xf32>
    %24 = arith.truncf %21 : vector<2x8x8xf32> to vector<2x8x8xbf16>
    "tpu.trace_start"() <{level = 10 : i32, message = "bts,bsd->btd"}> : () -> ()
    %cst_9 = arith.constant dense<0.000000e+00> : vector<2x8x8xf32>
    %25 = tpu.matmul %24, %15, %cst_9 {dimension_numbers = #tpu.dot_dimension_numbers<[2], [1], [1], [2], [0, 0, 0, 1, 1, 2], [0], [0]>} : vector<2x8x8xbf16>, vector<2x8x8xbf16>, vector<2x8x8xf32> -> vector<2x8x8xf32>
    "tpu.trace_stop"() : () -> ()
    %26 = tpu.reciprocal %23 {approx = true} : vector<2x8x1xf32> -> vector<2x8x1xf32>
    %27 = vector.broadcast %26 : vector<2x8x1xf32> to vector<2x8x8xf32>
    %28 = arith.mulf %25, %27 : vector<2x8x8xf32>
    %29 = vector.shape_cast %28 : vector<2x8x8xf32> to vector<16x8xf32>
    %30 = arith.truncf %29 : vector<16x8xf32> to vector<16x8xbf16>
    %c0_10 = arith.constant 0 : index
    %c0_11 = arith.constant 0 : index
    %31 = vector.load %arg7[%c0_10, %c0_11] : memref<16x32xbf16, #tpu.memory_space<vmem>>, vector<16x8xbf16>
    tpu.vector_store %arg7[%c0_10, %c0_11], %30 {strides = array<i32>} : memref<16x32xbf16, #tpu.memory_space<vmem>>, vector<16x8xbf16>,
    %32 = vector.extract_strided_slice %10 {offsets = [0, 0, 8], sizes = [2, 8, 8], strides = [1, 1, 1]} : vector<2x8x32xbf16> to vector<2x8x8xbf16>
    %33 = vector.extract_strided_slice %11 {offsets = [0, 0, 8], sizes = [2, 8, 8], strides = [1, 1, 1]} : vector<2x8x32xbf16> to vector<2x8x8xbf16>
    %34 = vector.extract_strided_slice %12 {offsets = [0, 0, 8], sizes = [2, 8, 8], strides = [1, 1, 1]} : vector<2x8x32xbf16> to vector<2x8x8xbf16>
    "tpu.trace_start"() <{level = 10 : i32, message = "btd,bsd->bts"}> : () -> ()
    %cst_12 = arith.constant dense<0.000000e+00> : vector<2x8x8xf32>
    %35 = tpu.matmul %32, %33, %cst_12 {dimension_numbers = #tpu.dot_dimension_numbers<[2], [2], [1], [1], [0, 0, 0, 1, 1, 1], [0], [0]>} : vector<2x8x8xbf16>, vector<2x8x8xbf16>, vector<2x8x8xf32> -> vector<2x8x8xf32>
    "tpu.trace_stop"() : () -> ()
    %cst_13 = arith.constant dense<0xFF800000> : vector<2x8xf32>
    %36 = vector.multi_reduction <maximumf>, %35, %cst_13 [2] : vector<2x8x8xf32> to vector<2x8xf32>
    %37 = vector.shape_cast %36 : vector<2x8xf32> to vector<2x8x1xf32>
    %38 = vector.broadcast %37 : vector<2x8x1xf32> to vector<2x8x8xf32>
    %39 = arith.subf %35, %38 : vector<2x8x8xf32>
    %40 = math.exp %39 : vector<2x8x8xf32>
    %cst_14 = arith.constant dense<0.000000e+00> : vector<2x8xf32>
    %41 = vector.multi_reduction <add>, %40, %cst_14 [2] : vector<2x8x8xf32> to vector<2x8xf32>
    %42 = vector.shape_cast %41 : vector<2x8xf32> to vector<2x8x1xf32>
    %43 = arith.truncf %40 : vector<2x8x8xf32> to vector<2x8x8xbf16>
    "tpu.trace_start"() <{level = 10 : i32, message = "bts,bsd->btd"}> : () -> ()
    %cst_15 = arith.constant dense<0.000000e+00> : vector<2x8x8xf32>
    %44 = tpu.matmul %43, %34, %cst_15 {dimension_numbers = #tpu.dot_dimension_numbers<[2], [1], [1], [2], [0, 0, 0, 1, 1, 2], [0], [0]>} : vector<2x8x8xbf16>, vector<2x8x8xbf16>, vector<2x8x8xf32> -> vector<2x8x8xf32>
    "tpu.trace_stop"() : () -> ()
    %45 = tpu.reciprocal %42 {approx = true} : vector<2x8x1xf32> -> vector<2x8x1xf32>
    %46 = vector.broadcast %45 : vector<2x8x1xf32> to vector<2x8x8xf32>
    %47 = arith.mulf %44, %46 : vector<2x8x8xf32>
    %48 = vector.shape_cast %47 : vector<2x8x8xf32> to vector<16x8xf32>
    %49 = arith.truncf %48 : vector<16x8xf32> to vector<16x8xbf16>
    %c0_16 = arith.constant 0 : index
    %c8 = arith.constant 8 : index
    %50 = vector.load %arg7[%c0_16, %c8] : memref<16x32xbf16, #tpu.memory_space<vmem>>, vector<16x8xbf16>
    tpu.vector_store %arg7[%c0_16, %c8], %49 {strides = array<i32>} : memref<16x32xbf16, #tpu.memory_space<vmem>>, vector<16x8xbf16>,
    %51 = vector.extract_strided_slice %10 {offsets = [0, 0, 16], sizes = [2, 8, 8], strides = [1, 1, 1]} : vector<2x8x32xbf16> to vector<2x8x8xbf16>
    %52 = vector.extract_strided_slice %11 {offsets = [0, 0, 16], sizes = [2, 8, 8], strides = [1, 1, 1]} : vector<2x8x32xbf16> to vector<2x8x8xbf16>
    %53 = vector.extract_strided_slice %12 {offsets = [0, 0, 16], sizes = [2, 8, 8], strides = [1, 1, 1]} : vector<2x8x32xbf16> to vector<2x8x8xbf16>
    "tpu.trace_start"() <{level = 10 : i32, message = "btd,bsd->bts"}> : () -> ()
    %cst_17 = arith.constant dense<0.000000e+00> : vector<2x8x8xf32>
    %54 = tpu.matmul %51, %52, %cst_17 {dimension_numbers = #tpu.dot_dimension_numbers<[2], [2], [1], [1], [0, 0, 0, 1, 1, 1], [0], [0]>} : vector<2x8x8xbf16>, vector<2x8x8xbf16>, vector<2x8x8xf32> -> vector<2x8x8xf32>
    "tpu.trace_stop"() : () -> ()
    %cst_18 = arith.constant dense<0xFF800000> : vector<2x8xf32>
    %55 = vector.multi_reduction <maximumf>, %54, %cst_18 [2] : vector<2x8x8xf32> to vector<2x8xf32>
    %56 = vector.shape_cast %55 : vector<2x8xf32> to vector<2x8x1xf32>
    %57 = vector.broadcast %56 : vector<2x8x1xf32> to vector<2x8x8xf32>
    %58 = arith.subf %54, %57 : vector<2x8x8xf32>
    %59 = math.exp %58 : vector<2x8x8xf32>
    %cst_19 = arith.constant dense<0.000000e+00> : vector<2x8xf32>
    %60 = vector.multi_reduction <add>, %59, %cst_19 [2] : vector<2x8x8xf32> to vector<2x8xf32>
    %61 = vector.shape_cast %60 : vector<2x8xf32> to vector<2x8x1xf32>
    %62 = arith.truncf %59 : vector<2x8x8xf32> to vector<2x8x8xbf16>
    "tpu.trace_start"() <{level = 10 : i32, message = "bts,bsd->btd"}> : () -> ()
    %cst_20 = arith.constant dense<0.000000e+00> : vector<2x8x8xf32>
    %63 = tpu.matmul %62, %53, %cst_20 {dimension_numbers = #tpu.dot_dimension_numbers<[2], [1], [1], [2], [0, 0, 0, 1, 1, 2], [0], [0]>} : vector<2x8x8xbf16>, vector<2x8x8xbf16>, vector<2x8x8xf32> -> vector<2x8x8xf32>
    "tpu.trace_stop"() : () -> ()
    %64 = tpu.reciprocal %61 {approx = true} : vector<2x8x1xf32> -> vector<2x8x1xf32>
    %65 = vector.broadcast %64 : vector<2x8x1xf32> to vector<2x8x8xf32>
    %66 = arith.mulf %63, %65 : vector<2x8x8xf32>
    %67 = vector.shape_cast %66 : vector<2x8x8xf32> to vector<16x8xf32>
    %68 = arith.truncf %67 : vector<16x8xf32> to vector<16x8xbf16>
    %c0_21 = arith.constant 0 : index
    %c16 = arith.constant 16 : index
    %69 = vector.load %arg7[%c0_21, %c16] : memref<16x32xbf16, #tpu.memory_space<vmem>>, vector<16x8xbf16>
    tpu.vector_store %arg7[%c0_21, %c16], %68 {strides = array<i32>} : memref<16x32xbf16, #tpu.memory_space<vmem>>, vector<16x8xbf16>,
    %70 = vector.extract_strided_slice %10 {offsets = [0, 0, 24], sizes = [2, 8, 8], strides = [1, 1, 1]} : vector<2x8x32xbf16> to vector<2x8x8xbf16>
    %71 = vector.extract_strided_slice %11 {offsets = [0, 0, 24], sizes = [2, 8, 8], strides = [1, 1, 1]} : vector<2x8x32xbf16> to vector<2x8x8xbf16>
    %72 = vector.extract_strided_slice %12 {offsets = [0, 0, 24], sizes = [2, 8, 8], strides = [1, 1, 1]} : vector<2x8x32xbf16> to vector<2x8x8xbf16>
    "tpu.trace_start"() <{level = 10 : i32, message = "btd,bsd->bts"}> : () -> ()
    %cst_22 = arith.constant dense<0.000000e+00> : vector<2x8x8xf32>
    %73 = tpu.matmul %70, %71, %cst_22 {dimension_numbers = #tpu.dot_dimension_numbers<[2], [2], [1], [1], [0, 0, 0, 1, 1, 1], [0], [0]>} : vector<2x8x8xbf16>, vector<2x8x8xbf16>, vector<2x8x8xf32> -> vector<2x8x8xf32>
    "tpu.trace_stop"() : () -> ()
    %cst_23 = arith.constant dense<0xFF800000> : vector<2x8xf32>
    %74 = vector.multi_reduction <maximumf>, %73, %cst_23 [2] : vector<2x8x8xf32> to vector<2x8xf32>
    %75 = vector.shape_cast %74 : vector<2x8xf32> to vector<2x8x1xf32>
    %76 = vector.broadcast %75 : vector<2x8x1xf32> to vector<2x8x8xf32>
    %77 = arith.subf %73, %76 : vector<2x8x8xf32>
    %78 = math.exp %77 : vector<2x8x8xf32>
    %cst_24 = arith.constant dense<0.000000e+00> : vector<2x8xf32>
    %79 = vector.multi_reduction <add>, %78, %cst_24 [2] : vector<2x8x8xf32> to vector<2x8xf32>
    %80 = vector.shape_cast %79 : vector<2x8xf32> to vector<2x8x1xf32>
    %81 = arith.truncf %78 : vector<2x8x8xf32> to vector<2x8x8xbf16>
    "tpu.trace_start"() <{level = 10 : i32, message = "bts,bsd->btd"}> : () -> ()
    %cst_25 = arith.constant dense<0.000000e+00> : vector<2x8x8xf32>
    %82 = tpu.matmul %81, %72, %cst_25 {dimension_numbers = #tpu.dot_dimension_numbers<[2], [1], [1], [2], [0, 0, 0, 1, 1, 2], [0], [0]>} : vector<2x8x8xbf16>, vector<2x8x8xbf16>, vector<2x8x8xf32> -> vector<2x8x8xf32>
    "tpu.trace_stop"() : () -> ()
    %83 = tpu.reciprocal %80 {approx = true} : vector<2x8x1xf32> -> vector<2x8x1xf32>
    %84 = vector.broadcast %83 : vector<2x8x1xf32> to vector<2x8x8xf32>
    %85 = arith.mulf %82, %84 : vector<2x8x8xf32>
    %86 = vector.shape_cast %85 : vector<2x8x8xf32> to vector<16x8xf32>
    %87 = arith.truncf %86 : vector<16x8xf32> to vector<16x8xbf16>
    %c0_26 = arith.constant 0 : index
    %c24 = arith.constant 24 : index
    %88 = vector.load %arg7[%c0_26, %c24] : memref<16x32xbf16, #tpu.memory_space<vmem>>, vector<16x8xbf16>
    tpu.vector_store %arg7[%c0_26, %c24], %87 {strides = array<i32>} : memref<16x32xbf16, #tpu.memory_space<vmem>>, vector<16x8xbf16>,
    %c0_27 = arith.constant 0 : index
    %c0_28 = arith.constant 0 : index
    %89 = vector.load %arg7[%c0_27, %c0_28] : memref<16x32xbf16, #tpu.memory_space<vmem>>, vector<16x32xbf16>
    %c0_29 = arith.constant 0 : index
    %c0_30 = arith.constant 0 : index
    %90 = vector.load %arg4[%c0_29, %c0_30] : memref<32x32xbf16, #tpu.memory_space<vmem>>, vector<32x32xbf16>
    %cst_31 = arith.constant dense<0.000000e+00> : vector<16x32xf32>
    %91 = tpu.matmul %89, %90, %cst_31 {dimension_numbers = #tpu.dot_dimension_numbers<[1], [0], [0], [1], [0, 0, 1, 1], [], []>} : vector<16x32xbf16>, vector<32x32xbf16>, vector<16x32xf32> -> vector<16x32xf32>
    %c0_32 = arith.constant 0 : index
    %c0_33 = arith.constant 0 : index
    %92 = vector.load %arg5[%c0_32, %c0_33] : memref<1x32xf32, #tpu.memory_space<vmem>>, vector<1x32xf32>
    %93 = vector.broadcast %92 : vector<1x32xf32> to vector<16x32xf32>
    %94 = arith.addf %91, %93 : vector<16x32xf32>
    %95 = vector.shape_cast %94 : vector<16x32xf32> to vector<2x8x32xf32>
    %c0_34 = arith.constant 0 : index
    %c0_35 = arith.constant 0 : index
    %c0_36 = arith.constant 0 : index
    %96 = vector.load %arg6[%c0_34, %c0_35, %c0_36] : memref<2x8x32xf32, #tpu.memory_space<vmem>>, vector<2x8x32xf32>
    tpu.vector_store %arg6[%c0_34, %c0_35, %c0_36], %95 {strides = array<i32>} : memref<2x8x32xf32, #tpu.memory_space<vmem>>, vector<2x8x32xf32>,
    return
  }
  func.func @transform_0(%arg0: i32) -> (i32, i32, i32) {
    %c0_i32 = arith.constant 0 : i32
    %c0_i32_0 = arith.constant 0 : i32
    %c0_i32_1 = arith.constant 0 : i32
    return %arg0, %c0_i32, %c0_i32_0 : i32, i32, i32
  }
  func.func @transform_1(%arg0: i32) -> (i32, i32) {
    %c0_i32 = arith.constant 0 : i32
    %c0_i32_0 = arith.constant 0 : i32
    %c0_i32_1 = arith.constant 0 : i32
    return %c0_i32, %c0_i32_0 : i32, i32
  }
  func.func @transform_2(%arg0: i32) -> (i32, i32) {
    %c0_i32 = arith.constant 0 : i32
    %c0_i32_0 = arith.constant 0 : i32
    %c0_i32_1 = arith.constant 0 : i32
    return %c0_i32, %c0_i32_0 : i32, i32
  }
  func.func @transform_3(%arg0: i32) -> (i32, i32) {
    %c0_i32 = arith.constant 0 : i32
    %c0_i32_0 = arith.constant 0 : i32
    %c0_i32_1 = arith.constant 0 : i32
    return %c0_i32, %c0_i32_0 : i32, i32
  }
  func.func @transform_4(%arg0: i32) -> (i32, i32) {
    %c0_i32 = arith.constant 0 : i32
    %c0_i32_0 = arith.constant 0 : i32
    %c0_i32_1 = arith.constant 0 : i32
    return %c0_i32, %c0_i32_0 : i32, i32
  }
  func.func @transform_5(%arg0: i32) -> (i32, i32, i32) {
    %c0_i32 = arith.constant 0 : i32
    %c0_i32_0 = arith.constant 0 : i32
    %c0_i32_1 = arith.constant 0 : i32
    return %arg0, %c0_i32, %c0_i32_0 : i32, i32, i32
  }
}

module attributes {stable_mosaic.version = 11 : i64} {
  func.func @mhsa_kernel(%arg0: i32, %arg1: memref<2x8x32xf32, #tpu.memory_space<vmem>>, %arg2: memref<32x96xbf16, #tpu.memory_space<vmem>>, %arg3: memref<1x96xf32, #tpu.memory_space<vmem>>, %arg4: memref<32x32xbf16, #tpu.memory_space<vmem>>, %arg5: memref<1x32xf32, #tpu.memory_space<vmem>>, %arg6: memref<2x8x32xf32, #tpu.memory_space<vmem>>, %arg7: memref<16x32xbf16, #tpu.memory_space<vmem>>) attributes {dimension_semantics = [#tpu.dimension_semantics<parallel>], iteration_bounds = array<i64: 1>, scalar_prefetch = 0 : i64, scratch_operands = 1 : i64, tpu.core_type = #tpu.core_type<tc>, window_params = [{transform_indices = @transform_0, window_bounds = array<i64: 2, 8, 32>}, {pipeline_mode = #tpu.pipeline_mode<synchronous>, transform_indices = @transform_1, window_bounds = array<i64: 32, 96>}, {pipeline_mode = #tpu.pipeline_mode<synchronous>, transform_indices = @transform_2, window_bounds = array<i64: 1, 96>}, {pipeline_mode = #tpu.pipeline_mode<synchronous>, transform_indices = @transform_3, window_bounds = array<i64: 32, 32>}, {pipeline_mode = #tpu.pipeline_mode<synchronous>, transform_indices = @transform_4, window_bounds = array<i64: 1, 32>}, {transform_indices = @transform_5, window_bounds = array<i64: 2, 8, 32>}]} {
    %c0 = arith.constant 0 : index
    %c0_0 = arith.constant 0 : index
    %c0_1 = arith.constant 0 : index
    %0 = vector.load %arg1[%c0, %c0_0, %c0_1] : memref<2x8x32xf32, #tpu.memory_space<vmem>>, vector<2x8x32xf32>
    %1 = vector.shape_cast %0 : vector<2x8x32xf32> to vector<16x32xf32>
    %2 = arith.truncf %1 : vector<16x32xf32> to vector<16x32xbf16>
    %c0_2 = arith.constant 0 : index
    %c0_3 = arith.constant 0 : index
    %3 = vector.load %arg2[%c0_2, %c0_3] : memref<32x96xbf16, #tpu.memory_space<vmem>>, vector<32x96xbf16>
    %cst = arith.constant dense<0.000000e+00> : vector<16x96xf32>
    %4 = tpu.matmul %2, %3, %cst {dimension_numbers = #tpu.dot_dimension_numbers<[1], [0], [0], [1], [0, 0, 1, 1], [], []>} : vector<16x32xbf16>, vector<32x96xbf16>, vector<16x96xf32> -> vector<16x96xf32>
    %c0_4 = arith.constant 0 : index
    %c0_5 = arith.constant 0 : index
    %5 = vector.load %arg3[%c0_4, %c0_5] : memref<1x96xf32, #tpu.memory_space<vmem>>, vector<1x96xf32>
    %6 = vector.broadcast %5 : vector<1x96xf32> to vector<16x96xf32>
    %7 = arith.addf %4, %6 : vector<16x96xf32>
    %8 = arith.truncf %7 : vector<16x96xf32> to vector<16x96xbf16>
    %9 = vector.shape_cast %8 : vector<16x96xbf16> to vector<2x8x96xbf16>
    %10 = vector.extract_strided_slice %9 {offsets = [0, 0, 0], sizes = [2, 8, 32], strides = [1, 1, 1]} : vector<2x8x96xbf16> to vector<2x8x32xbf16>
    %11 = vector.extract_strided_slice %9 {offsets = [0, 0, 32], sizes = [2, 8, 32], strides = [1, 1, 1]} : vector<2x8x96xbf16> to vector<2x8x32xbf16>
    %12 = vector.extract_strided_slice %9 {offsets = [0, 0, 64], sizes = [2, 8, 32], strides = [1, 1, 1]} : vector<2x8x96xbf16> to vector<2x8x32xbf16>
    %13 = vector.extract_strided_slice %10 {offsets = [0, 0, 0], sizes = [2, 8, 8], strides = [1, 1, 1]} : vector<2x8x32xbf16> to vector<2x8x8xbf16>
    %14 = vector.extract_strided_slice %11 {offsets = [0, 0, 0], sizes = [2, 8, 8], strides = [1, 1, 1]} : vector<2x8x32xbf16> to vector<2x8x8xbf16>
    %15 = vector.extract_strided_slice %12 {offsets = [0, 0, 0], sizes = [2, 8, 8], strides = [1, 1, 1]} : vector<2x8x32xbf16> to vector<2x8x8xbf16>
    "tpu.trace_start"() <{level = 10 : i32, message = "btd,bsd->bts"}> : () -> ()
    %cst_6 = arith.constant dense<0.000000e+00> : vector<2x8x8xf32>
    %16 = tpu.matmul %13, %14, %cst_6 {dimension_numbers = #tpu.dot_dimension_numbers<[2], [2], [1], [1], [0, 0, 0, 1, 1, 1], [0], [0]>} : vector<2x8x8xbf16>, vector<2x8x8xbf16>, vector<2x8x8xf32> -> vector<2x8x8xf32>
    "tpu.trace_stop"() : () -> ()
    %cst_7 = arith.constant dense<0xFF800000> : vector<2x8xf32>
    %17 = vector.multi_reduction <maximumf>, %16, %cst_7 [2] : vector<2x8x8xf32> to vector<2x8xf32>
    %18 = vector.shape_cast %17 : vector<2x8xf32> to vector<2x8x1xf32>
    %19 = vector.broadcast %18 : vector<2x8x1xf32> to vector<2x8x8xf32>
    %20 = arith.subf %16, %19 : vector<2x8x8xf32>
    %21 = math.exp %20 : vector<2x8x8xf32>
    %cst_8 = arith.constant dense<0.000000e+00> : vector<2x8xf32>
    %22 = vector.multi_reduction <add>, %21, %cst_8 [2] : vector<2x8x8xf32> to vector<2x8xf32>
    %23 = vector.shape_cast %22 : vector<2x8xf32> to vector<2x8x1xf32>
    %24 = arith.truncf %21 : vector<2x8x8xf32> to vector<2x8x8xbf16>
    "tpu.trace_start"() <{level = 10 : i32, message = "bts,bsd->btd"}> : () -> ()
    %cst_9 = arith.constant dense<0.000000e+00> : vector<2x8x8xf32>
    %25 = tpu.matmul %24, %15, %cst_9 {dimension_numbers = #tpu.dot_dimension_numbers<[2], [1], [1], [2], [0, 0, 0, 1, 1, 2], [0], [0]>} : vector<2x8x8xbf16>, vector<2x8x8xbf16>, vector<2x8x8xf32> -> vector<2x8x8xf32>
    "tpu.trace_stop"() : () -> ()
    %26 = tpu.reciprocal %23 {approx = true} : vector<2x8x1xf32> -> vector<2x8x1xf32>
    %27 = vector.broadcast %26 : vector<2x8x1xf32> to vector<2x8x8xf32>
    %28 = arith.mulf %25, %27 : vector<2x8x8xf32>
    %29 = vector.shape_cast %28 : vector<2x8x8xf32> to vector<16x8xf32>
    %30 = arith.truncf %29 : vector<16x8xf32> to vector<16x8xbf16>
    %c0_10 = arith.constant 0 : index
    %c0_11 = arith.constant 0 : index
    %31 = vector.load %arg7[%c0_10, %c0_11] : memref<16x32xbf16, #tpu.memory_space<vmem>>, vector<16x8xbf16>
    tpu.vector_store %arg7[%c0_10, %c0_11], %30 {strides = array<i32>} : memref<16x32xbf16, #tpu.memory_space<vmem>>, vector<16x8xbf16>,
    %32 = vector.extract_strided_slice %10 {offsets = [0, 0, 8], sizes = [2, 8, 8], strides = [1, 1, 1]} : vector<2x8x32xbf16> to vector<2x8x8xbf16>
    %33 = vector.extract_strided_slice %11 {offsets = [0, 0, 8], sizes = [2, 8, 8], strides = [1, 1, 1]} : vector<2x8x32xbf16> to vector<2x8x8xbf16>
    %34 = vector.extract_strided_slice %12 {offsets = [0, 0, 8], sizes = [2, 8, 8], strides = [1, 1, 1]} : vector<2x8x32xbf16> to vector<2x8x8xbf16>
    "tpu.trace_start"() <{level = 10 : i32, message = "btd,bsd->bts"}> : () -> ()
    %cst_12 = arith.constant dense<0.000000e+00> : vector<2x8x8xf32>
    %35 = tpu.matmul %32, %33, %cst_12 {dimension_numbers = #tpu.dot_dimension_numbers<[2], [2], [1], [1], [0, 0, 0, 1, 1, 1], [0], [0]>} : vector<2x8x8xbf16>, vector<2x8x8xbf16>, vector<2x8x8xf32> -> vector<2x8x8xf32>
    "tpu.trace_stop"() : () -> ()
    %cst_13 = arith.constant dense<0xFF800000> : vector<2x8xf32>
    %36 = vector.multi_reduction <maximumf>, %35, %cst_13 [2] : vector<2x8x8xf32> to vector<2x8xf32>
    %37 = vector.shape_cast %36 : vector<2x8xf32> to vector<2x8x1xf32>
    %38 = vector.broadcast %37 : vector<2x8x1xf32> to vector<2x8x8xf32>
    %39 = arith.subf %35, %38 : vector<2x8x8xf32>
    %40 = math.exp %39 : vector<2x8x8xf32>
    %cst_14 = arith.constant dense<0.000000e+00> : vector<2x8xf32>
    %41 = vector.multi_reduction <add>, %40, %cst_14 [2] : vector<2x8x8xf32> to vector<2x8xf32>
    %42 = vector.shape_cast %41 : vector<2x8xf32> to vector<2x8x1xf32>
    %43 = arith.truncf %40 : vector<2x8x8xf32> to vector<2x8x8xbf16>
    "tpu.trace_start"() <{level = 10 : i32, message = "bts,bsd->btd"}> : () -> ()
    %cst_15 = arith.constant dense<0.000000e+00> : vector<2x8x8xf32>
    %44 = tpu.matmul %43, %34, %cst_15 {dimension_numbers = #tpu.dot_dimension_numbers<[2], [1], [1], [2], [0, 0, 0, 1, 1, 2], [0], [0]>} : vector<2x8x8xbf16>, vector<2x8x8xbf16>, vector<2x8x8xf32> -> vector<2x8x8xf32>
    "tpu.trace_stop"() : () -> ()
    %45 = tpu.reciprocal %42 {approx = true} : vector<2x8x1xf32> -> vector<2x8x1xf32>
    %46 = vector.broadcast %45 : vector<2x8x1xf32> to vector<2x8x8xf32>
    %47 = arith.mulf %44, %46 : vector<2x8x8xf32>
    %48 = vector.shape_cast %47 : vector<2x8x8xf32> to vector<16x8xf32>
    %49 = arith.truncf %48 : vector<16x8xf32> to vector<16x8xbf16>
    %c0_16 = arith.constant 0 : index
    %c8 = arith.constant 8 : index
    %50 = vector.load %arg7[%c0_16, %c8] : memref<16x32xbf16, #tpu.memory_space<vmem>>, vector<16x8xbf16>
    tpu.vector_store %arg7[%c0_16, %c8], %49 {strides = array<i32>} : memref<16x32xbf16, #tpu.memory_space<vmem>>, vector<16x8xbf16>,
    %51 = vector.extract_strided_slice %10 {offsets = [0, 0, 16], sizes = [2, 8, 8], strides = [1, 1, 1]} : vector<2x8x32xbf16> to vector<2x8x8xbf16>
    %52 = vector.extract_strided_slice %11 {offsets = [0, 0, 16], sizes = [2, 8, 8], strides = [1, 1, 1]} : vector<2x8x32xbf16> to vector<2x8x8xbf16>
    %53 = vector.extract_strided_slice %12 {offsets = [0, 0, 16], sizes = [2, 8, 8], strides = [1, 1, 1]} : vector<2x8x32xbf16> to vector<2x8x8xbf16>
    "tpu.trace_start"() <{level = 10 : i32, message = "btd,bsd->bts"}> : () -> ()
    %cst_17 = arith.constant dense<0.000000e+00> : vector<2x8x8xf32>
    %54 = tpu.matmul %51, %52, %cst_17 {dimension_numbers = #tpu.dot_dimension_numbers<[2], [2], [1], [1], [0, 0, 0, 1, 1, 1], [0], [0]>} : vector<2x8x8xbf16>, vector<2x8x8xbf16>, vector<2x8x8xf32> -> vector<2x8x8xf32>
    "tpu.trace_stop"() : () -> ()
    %cst_18 = arith.constant dense<0xFF800000> : vector<2x8xf32>
    %55 = vector.multi_reduction <maximumf>, %54, %cst_18 [2] : vector<2x8x8xf32> to vector<2x8xf32>
    %56 = vector.shape_cast %55 : vector<2x8xf32> to vector<2x8x1xf32>
    %57 = vector.broadcast %56 : vector<2x8x1xf32> to vector<2x8x8xf32>
    %58 = arith.subf %54, %57 : vector<2x8x8xf32>
    %59 = math.exp %58 : vector<2x8x8xf32>
    %cst_19 = arith.constant dense<0.000000e+00> : vector<2x8xf32>
    %60 = vector.multi_reduction <add>, %59, %cst_19 [2] : vector<2x8x8xf32> to vector<2x8xf32>
    %61 = vector.shape_cast %60 : vector<2x8xf32> to vector<2x8x1xf32>
    %62 = arith.truncf %59 : vector<2x8x8xf32> to vector<2x8x8xbf16>
    "tpu.trace_start"() <{level = 10 : i32, message = "bts,bsd->btd"}> : () -> ()
    %cst_20 = arith.constant dense<0.000000e+00> : vector<2x8x8xf32>
    %63 = tpu.matmul %62, %53, %cst_20 {dimension_numbers = #tpu.dot_dimension_numbers<[2], [1], [1], [2], [0, 0, 0, 1, 1, 2], [0], [0]>} : vector<2x8x8xbf16>, vector<2x8x8xbf16>, vector<2x8x8xf32> -> vector<2x8x8xf32>
    "tpu.trace_stop"() : () -> ()
    %64 = tpu.reciprocal %61 {approx = true} : vector<2x8x1xf32> -> vector<2x8x1xf32>
    %65 = vector.broadcast %64 : vector<2x8x1xf32> to vector<2x8x8xf32>
    %66 = arith.mulf %63, %65 : vector<2x8x8xf32>
    %67 = vector.shape_cast %66 : vector<2x8x8xf32> to vector<16x8xf32>
    %68 = arith.truncf %67 : vector<16x8xf32> to vector<16x8xbf16>
    %c0_21 = arith.constant 0 : index
    %c16 = arith.constant 16 : index
    %69 = vector.load %arg7[%c0_21, %c16] : memref<16x32xbf16, #tpu.memory_space<vmem>>, vector<16x8xbf16>
    tpu.vector_store %arg7[%c0_21, %c16], %68 {strides = array<i32>} : memref<16x32xbf16, #tpu.memory_space<vmem>>, vector<16x8xbf16>,
    %70 = vector.extract_strided_slice %10 {offsets = [0, 0, 24], sizes = [2, 8, 8], strides = [1, 1, 1]} : vector<2x8x32xbf16> to vector<2x8x8xbf16>
    %71 = vector.extract_strided_slice %11 {offsets = [0, 0, 24], sizes = [2, 8, 8], strides = [1, 1, 1]} : vector<2x8x32xbf16> to vector<2x8x8xbf16>
    %72 = vector.extract_strided_slice %12 {offsets = [0, 0, 24], sizes = [2, 8, 8], strides = [1, 1, 1]} : vector<2x8x32xbf16> to vector<2x8x8xbf16>
    "tpu.trace_start"() <{level = 10 : i32, message = "btd,bsd->bts"}> : () -> ()
    %cst_22 = arith.constant dense<0.000000e+00> : vector<2x8x8xf32>
    %73 = tpu.matmul %70, %71, %cst_22 {dimension_numbers = #tpu.dot_dimension_numbers<[2], [2], [1], [1], [0, 0, 0, 1, 1, 1], [0], [0]>} : vector<2x8x8xbf16>, vector<2x8x8xbf16>, vector<2x8x8xf32> -> vector<2x8x8xf32>
    "tpu.trace_stop"() : () -> ()
    %cst_23 = arith.constant dense<0xFF800000> : vector<2x8xf32>
    %74 = vector.multi_reduction <maximumf>, %73, %cst_23 [2] : vector<2x8x8xf32> to vector<2x8xf32>
    %75 = vector.shape_cast %74 : vector<2x8xf32> to vector<2x8x1xf32>
    %76 = vector.broadcast %75 : vector<2x8x1xf32> to vector<2x8x8xf32>
    %77 = arith.subf %73, %76 : vector<2x8x8xf32>
    %78 = math.exp %77 : vector<2x8x8xf32>
    %cst_24 = arith.constant dense<0.000000e+00> : vector<2x8xf32>
    %79 = vector.multi_reduction <add>, %78, %cst_24 [2] : vector<2x8x8xf32> to vector<2x8xf32>
    %80 = vector.shape_cast %79 : vector<2x8xf32> to vector<2x8x1xf32>
    %81 = arith.truncf %78 : vector<2x8x8xf32> to vector<2x8x8xbf16>
    "tpu.trace_start"() <{level = 10 : i32, message = "bts,bsd->btd"}> : () -> ()
    %cst_25 = arith.constant dense<0.000000e+00> : vector<2x8x8xf32>
    %82 = tpu.matmul %81, %72, %cst_25 {dimension_numbers = #tpu.dot_dimension_numbers<[2], [1], [1], [2], [0, 0, 0, 1, 1, 2], [0], [0]>} : vector<2x8x8xbf16>, vector<2x8x8xbf16>, vector<2x8x8xf32> -> vector<2x8x8xf32>
    "tpu.trace_stop"() : () -> ()
    %83 = tpu.reciprocal %80 {approx = true} : vector<2x8x1xf32> -> vector<2x8x1xf32>
    %84 = vector.broadcast %83 : vector<2x8x1xf32> to vector<2x8x8xf32>
    %85 = arith.mulf %82, %84 : vector<2x8x8xf32>
    %86 = vector.shape_cast %85 : vector<2x8x8xf32> to vector<16x8xf32>
    %87 = arith.truncf %86 : vector<16x8xf32> to vector<16x8xbf16>
    %c0_26 = arith.constant 0 : index
    %c24 = arith.constant 24 : index
    %88 = vector.load %arg7[%c0_26, %c24] : memref<16x32xbf16, #tpu.memory_space<vmem>>, vector<16x8xbf16>
    tpu.vector_store %arg7[%c0_26, %c24], %87 {strides = array<i32>} : memref<16x32xbf16, #tpu.memory_space<vmem>>, vector<16x8xbf16>,
    %c0_27 = arith.constant 0 : index
    %c0_28 = arith.constant 0 : index
    %89 = vector.load %arg7[%c0_27, %c0_28] : memref<16x32xbf16, #tpu.memory_space<vmem>>, vector<16x32xbf16>
    %c0_29 = arith.constant 0 : index
    %c0_30 = arith.constant 0 : index
    %90 = vector.load %arg4[%c0_29, %c0_30] : memref<32x32xbf16, #tpu.memory_space<vmem>>, vector<32x32xbf16>
    %cst_31 = arith.constant dense<0.000000e+00> : vector<16x32xf32>
    %91 = tpu.matmul %89, %90, %cst_31 {dimension_numbers = #tpu.dot_dimension_numbers<[1], [0], [0], [1], [0, 0, 1, 1], [], []>} : vector<16x32xbf16>, vector<32x32xbf16>, vector<16x32xf32> -> vector<16x32xf32>
    %c0_32 = arith.constant 0 : index
    %c0_33 = arith.constant 0 : index
    %92 = vector.load %arg5[%c0_32, %c0_33] : memref<1x32xf32, #tpu.memory_space<vmem>>, vector<1x32xf32>
    %93 = vector.broadcast %92 : vector<1x32xf32> to vector<16x32xf32>
    %94 = arith.addf %91, %93 : vector<16x32xf32>
    %95 = vector.shape_cast %94 : vector<16x32xf32> to vector<2x8x32xf32>
    %c0_34 = arith.constant 0 : index
    %c0_35 = arith.constant 0 : index
    %c0_36 = arith.constant 0 : index
    %96 = vector.load %arg6[%c0_34, %c0_35, %c0_36] : memref<2x8x32xf32, #tpu.memory_space<vmem>>, vector<2x8x32xf32>
    tpu.vector_store %arg6[%c0_34, %c0_35, %c0_36], %95 {strides = array<i32>} : memref<2x8x32xf32, #tpu.memory_space<vmem>>, vector<2x8x32xf32>,
    return
  }
  func.func @transform_0(%arg0: i32) -> (i32, i32, i32) {
    %c0_i32 = arith.constant 0 : i32
    %c0_i32_0 = arith.constant 0 : i32
    %c0_i32_1 = arith.constant 0 : i32
    return %arg0, %c0_i32, %c0_i32_0 : i32, i32, i32
  }
  func.func @transform_1(%arg0: i32) -> (i32, i32) {
    %c0_i32 = arith.constant 0 : i32
    %c0_i32_0 = arith.constant 0 : i32
    %c0_i32_1 = arith.constant 0 : i32
    return %c0_i32, %c0_i32_0 : i32, i32
  }
  func.func @transform_2(%arg0: i32) -> (i32, i32) {
    %c0_i32 = arith.constant 0 : i32
    %c0_i32_0 = arith.constant 0 : i32
    %c0_i32_1 = arith.constant 0 : i32
    return %c0_i32, %c0_i32_0 : i32, i32
  }
  func.func @transform_3(%arg0: i32) -> (i32, i32) {
    %c0_i32 = arith.constant 0 : i32
    %c0_i32_0 = arith.constant 0 : i32
    %c0_i32_1 = arith.constant 0 : i32
    return %c0_i32, %c0_i32_0 : i32, i32
  }
  func.func @transform_4(%arg0: i32) -> (i32, i32) {
    %c0_i32 = arith.constant 0 : i32
    %c0_i32_0 = arith.constant 0 : i32
    %c0_i32_1 = arith.constant 0 : i32
    return %c0_i32, %c0_i32_0 : i32, i32
  }
  func.func @transform_5(%arg0: i32) -> (i32, i32, i32) {
    %c0_i32 = arith.constant 0 : i32
    %c0_i32_0 = arith.constant 0 : i32
    %c0_i32_1 = arith.constant 0 : i32
    return %arg0, %c0_i32, %c0_i32_0 : i32, i32, i32
  }
}

</mosaic_0001>

<bundles_post_ra>
// kernel: tpu_custom_call.1
= control target key start
LH: loop header
LB: loop body
LE: loop exit
PB: predicated region body
PF: predicated region fallthrough
CT: control target
= control target key end

     0   :  { %10 = vsyncpa [#allocation4], 0  ;;  %s1757_s0 = inlined_call_operand.hbm [shape: f32[2,8,32], index: 0, kind: input, shape index: {}]   ;;  %s1758_s1 = inlined_call_operand.hbm [shape: bf16[32,96], index: 1, kind: input, shape index: {}]   ;;  %s1759_s2 = inlined_call_operand.vmem [shape: f32[1,96], index: 2, kind: input, shape index: {}]   ;;  %s1760_s3 = inlined_call_operand.hbm [shape: bf16[32,32], index: 3, kind: input, shape index: {}]   ;;  %s1761_s4 = inlined_call_operand.vmem [shape: f32[1,32], index: 4, kind: input, shape index: {}]   ;;  %s1762_s5 = inlined_call_operand.hbm [shape: f32[2,8,32], index: 5, kind: output, shape index: {}]  }
   0x1   :  { %11 = vsyncpa [#allocation7], 0 }
   0x2   :  { %12 = vsyncpa [#allocation5], 0  ;;  %s1459_s18 = smov [#allocation6]   ;;  %s1365_s22 = scalar_lea.hbm %s1758_s1, 256 }
   0x3   :  { %s30_s19 = sshll.u32 %s1459_s18, 4  ;;  %p1366_p0 = scmp.ne.s32.totalorder %s1758_s1, %s1365_s22  ;;  %s31_s19 = int_to_ptr.vmem [resolvable:$true] %s30_s19 }
   0x4   :  { %p1369_p1 = scmp.lt.u32.totalorder %s1365_s22, %s1758_s1 }
   0x6   :  { %p1371_p2 = pnand %p1369_p1, %p1366_p0 }
   0x8   :  { %1374 = shalt.err (!%p1371_p2)
}
   0x9   :  { %s1375_s27 = scalar_lea.vmem %s31_s19, 256  ;;  %p1380_p4 = scmp.lt.s32.totalorder %s31_s19, %s31_s19 }
   0xa   :  { %p1376_p3 = scmp.ne.s32.totalorder %s31_s19, %s1375_s27  ;;  %p1381_p5 = scmp.lt.s32.totalorder %s1375_s27, %s1375_s27 }
   0xc   :  { %p1382_p6 = por %p1381_p5, %p1380_p4 }
   0xe   :  { %p1383_p7 = pnand %p1382_p6, %p1376_p3 }
  0x10   :  { %1386 = shalt.err (!%p1383_p7)
}
  0x11   :  { %s1460_s28 = smov 64   ;;  %s1461_s29 = smov 4  }
  0x12   :  { %36 = dma.hbm_to_vmem [thread:$0]  %s1758_s1, 256, %s31_s19, [#allocation7], %s1460_s28, %s1460_s28, %s1461_s29  }
  0x13   :  { %s1462_s7 = smov [#allocation3]   ;;  %s1387_s11 = scalar_lea.hbm %s1757_s0, 256 }
  0x14   :  { %s18_s8 = sshll.u32 %s1462_s7, 4  ;;  %p1388_p8 = scmp.ne.s32.totalorder %s1757_s0, %s1387_s11  ;;  %s19_s8 = int_to_ptr.vmem [resolvable:$true] %s18_s8 }
  0x15   :  { %p1391_p9 = scmp.lt.u32.totalorder %s1387_s11, %s1757_s0 }
  0x17   :  { %p1393_p10 = pnand %p1391_p9, %p1388_p8 }
  0x19   :  { %1396 = shalt.err (!%p1393_p10)
}
  0x1a   :  { %s1397_s16 = scalar_lea.vmem %s19_s8, 256  ;;  %p1402_p12 = scmp.lt.s32.totalorder %s19_s8, %s19_s8 }
  0x1b   :  { %p1398_p11 = scmp.ne.s32.totalorder %s19_s8, %s1397_s16  ;;  %p1403_p13 = scmp.lt.s32.totalorder %s1397_s16, %s1397_s16 }
  0x1d   :  { %p1404_p0 = por %p1403_p13, %p1402_p12 }
  0x1f   :  { %p1405_p1 = pnand %p1404_p0, %p1398_p11 }
  0x21   :  { %1408 = shalt.err (!%p1405_p1)
}
  0x22   :  { %s1463_s1 = smov 128   ;;  %s1464_s17 = smov 8  }
  0x23   :  { %24 = dma.hbm_to_vmem [thread:$0]  %s1757_s0, 256, %s19_s8, [#allocation4], %s1463_s1, %s1463_s1, %s1464_s17  }
  0x24   :  { %s1465_s20 = smov [#allocation8]   ;;  %s1409_s24 = scalar_lea.hbm %s1760_s3, 256 }
  0x25   :  { %s44_s21 = sshll.u32 %s1465_s20, 4  ;;  %p1410_p2 = scmp.ne.s32.totalorder %s1760_s3, %s1409_s24  ;;  %s45_s21 = int_to_ptr.vmem [resolvable:$true] %s44_s21 }
  0x26   :  { %p1413_p3 = scmp.lt.u32.totalorder %s1409_s24, %s1760_s3 }
  0x28   :  { %p1415_p4 = pnand %p1413_p3, %p1410_p2 }
  0x2a   :  { %1418 = shalt.err (!%p1415_p4)
}
  0x2b   :  { %s1419_s6 = scalar_lea.vmem %s45_s21, 256  ;;  %p1424_p6 = scmp.lt.s32.totalorder %s45_s21, %s45_s21 }
  0x2c   :  { %p1420_p5 = scmp.ne.s32.totalorder %s45_s21, %s1419_s6  ;;  %p1425_p7 = scmp.lt.s32.totalorder %s1419_s6, %s1419_s6 }
  0x2e   :  { %p1426_p8 = por %p1425_p7, %p1424_p6 }
  0x30   :  { %p1427_p9 = pnand %p1426_p8, %p1420_p5 }
  0x32   :  { %1430 = shalt.err (!%p1427_p9)
}
  0x33   :  { %50 = dma.hbm_to_vmem [thread:$0]  %s1760_s3, 256, %s45_s21, [#allocation7], %s1460_s28, %s1460_s28, %s1461_s29  }
  0x34   :  { %1453 = dma.done.wait [#allocation4], 256  }
  0x35   :  { %1454 = vsyncadd [#allocation4], 4294967040 }
  0x36   :  { %1455 = dma.done.wait [#allocation7], 512  }
  0x37   :  { %1456 = vsyncadd [#allocation7], 4294966784  ;;  %v1466_v0 = vmov 0.0   ;;  %vm1467_vm0 = vmmov 0   ;;  %v1329_v1 = vld [vmem:[#allocation6] sm:$0xff]   ;;  %v1330_v2 = vld [vmem:[#allocation6 + $0x8] sm:$0xff]  }
  0x38   :  { %1195 = vmatprep.subr.bf16.mxu0 %v1466_v0  ;;  %1199 = vmatprep.mubr.msk.bf16.mxu0 %vm1467_vm0, %v1466_v0  ;;  %v63_v3 = vld [vmem:[#allocation3] sm:$0xff]  ;;  %v64_v4 = vld [vmem:[#allocation3 + $0x8] sm:$0xff]  ;;  %vm89_vm1 = vcmask 261120   ;;  %v1129_v6 = vld [vmem:[%s1759_s2] ss:$0 sm:$0xff]  ;;  %s1468_s8 = smov 96  }
  0x39   :  { %1203 = vmatprep.subr.bf16.mxu1 %v1466_v0  ;;  %1205 = vmatprep.mubr.msk.bf16.mxu1 %vm1467_vm0, %v1466_v0  ;;  %v65_v5 = vpack.c.bf16 %v64_v4, %v63_v3  ;;  %s1469_s9 = smov 88   ;;  %s1470_s2 = smov 120   ;;  %vm142_vm2 = vcmask 64512   ;;  %vm262_vm3 = vcmask 1043456   ;;  %vm585_vm4 = vcmask 130112  }
  0x3a   :  { %1196 = vmatpush3.bf16.msra.mxu0 %v1329_v1  ;;  %s1471_s10 = smov 56   ;;  %s1473_s11 = smov 112   ;;  %vm812_vm5 = vcmask 195712   ;;  %vm1039_vm6 = vcmask 261312  }
  0x3b   :  { %1197 = vmatprep.subr.bf16.mxu0 %v1466_v0  ;;  %s1474_s12 = smov 48   ;;  %s1475_s13 = smov 72  }
  0x3c   :  { %s1476_s14 = smov 104   ;;  %s1477_s15 = smov 40  }
  0x3d   :  { %s1478_s16 = smov 16   ;;  %s1479_s18 = smov 24  }
  0x3e   :  { %1198 = vmatpush3.bf16.msra.mxu0 %v1330_v2  ;;  %s1480_s21 = smov [#allocation9]  }
  0x3f   :  { %1209 = vmatprep.subr.bf16.mxu0 %v1466_v0  ;;  %s1116_s22 = sshll.u32 %s1480_s21, 4  ;;  %s1117_s22 = int_to_ptr.vmem [resolvable:$true] %s1116_s22 }
  0x40   :  { %s1431_s23 = scalar_lea.vmem %s1117_s22, 256  ;;  %p1436_p11 = scmp.lt.s32.totalorder %s1117_s22, %s1117_s22 }
  0x41   :  { %1200 = vmatmul.mubr.msk.bf16.vlgmr.msra.gmra.mrb[0].mxu0 %vm89_vm1, %v65_v5  ;;  %p1432_p10 = scmp.ne.s32.totalorder %s1117_s22, %s1431_s23  ;;  %p1437_p12 = scmp.lt.s32.totalorder %s1431_s23, %s1431_s23 }
  0x42   :  { %1211 = vmatprep.mubr.msk.bf16.mxu0 %vm1467_vm0, %v1466_v0 }
  0x43   :  { %p1438_p13 = por %p1437_p12, %p1436_p11 }
  0x45   :  { %p1439_p0 = pnand %p1438_p13, %p1432_p10 }
 0x114   :  { %v127_v7 = vpop.f32.mrb[0].mxu0 }
 0x115   :  { %v128_v8 = vadd.f32 %v1129_v6, %v127_v7  ;;  %v1201_v9 = vpop.f32.mrb[1].mxu0 }
 0x116   :  { %v130_v10 = vpop.f32.mrb[2].mxu0 }
 0x117   :  { %v1570_v11 = vpack.c.bf16 %v128_v8, %v128_v8  ;;  %v131_v12 = vadd.f32 %v1129_v6, %v130_v10  ;;  %v1202_v13 = vpop.f32.mrb[3].mxu0 }
 0x119   :  { %140 = vrot.lane.b32.xlu0 %v1570_v11, %s1468_s8  ;;  %v1573_v14 = vpack.c.bf16 %v131_v12, %v131_v12 }
 0x11d   :  { %189 = vrot.lane.b32.xlu0 %v1573_v14, %s1468_s8 }
 0x121   :  { %257 = vrot.lane.b32.xlu0 %v1570_v11, %s1460_s28 }
 0x125   :  { %362 = vrot.lane.b32.xlu0 %v1570_v11, %s1469_s9 }
 0x129   :  { %412 = vrot.lane.b32.xlu0 %v1573_v14, %s1469_s9 }
 0x12d   :  { %360 = vrot.lane.b32.xlu0 %v1570_v11, %s1470_s2 }
 0x131   :  { %410 = vrot.lane.b32.xlu0 %v1573_v14, %s1470_s2 }
 0x135   :  { %480 = vrot.lane.b32.xlu0 %v1570_v11, %s1471_s10 }
 0x18b   :  { %v141_v15 = vpop.permute.xlu0 %140 }
 0x18c   :  { %v147_v16 = vsel %vm142_vm2, %v141_v15, 0 }
 0x18d   :  { %1204 = vmatpush3.bf16.xpose.msra.mxu1 %v147_v16 }
 0x18e   :  { %1215 = vmatprep.subr.bf16.mxu1 %v1466_v0 }
 0x18f   :  { %v190_v17 = vpop.permute.xlu0 %189 }
 0x190   :  { %v195_v18 = vsel %vm142_vm2, %v190_v17, 0 }
 0x191   :  { %1210 = vmatpush3.bf16.xpose.msra.mxu0 %v195_v18 }
 0x192   :  { %1221 = vmatprep.subr.bf16.mxu0 %v1466_v0 }
 0x193   :  { %v258_v19 = vpop.permute.xlu0 %257 }
 0x194   :  { %v264_v20 = vsel %vm262_vm3, %v258_v19, 0  ;;  %1206 = vmatmul.mubr.msk.bf16.vlgmr.msra.gmra.mrb[0].mxu1 %vm142_vm2, %v1570_v11 }
 0x195   :  { %1216 = vmatpush3.bf16.msra.mxu1 %v264_v20  ;;  %1217 = vmatprep.mubr.msk.bf16.mxu1 %vm1467_vm0, %v1466_v0 }
 0x196   :  { %1227 = vmatprep.subr.bf16.mxu1 %v1466_v0 }
 0x197   :  { %v363_v31 = vpop.permute.xlu0 %362 }
 0x198   :  { %1212 = vmatmul.mubr.msk.bf16.vlgmr.msra.gmra.mrb[4].mxu0 %vm142_vm2, %v1573_v14  ;;  %v368_v45 = vsel %vm142_vm2, %v363_v31, 0 }
 0x199   :  { %1223 = vmatprep.mubr.msk.bf16.mxu0 %vm1467_vm0, %v1466_v0 }
 0x19b   :  { %v413_v36 = vpop.permute.xlu0 %412 }
 0x19c   :  { %v418_v48 = vsel %vm142_vm2, %v413_v36, 0 }
 0x19f   :  { %v361_v41 = vpop.permute.xlu0 %360 }
 0x1a3   :  { %v411_v44 = vpop.permute.xlu0 %410 }
 0x1a7   :  { %v481_v49 = vpop.permute.xlu0 %480 }
 0x1a8   :  { %v486_v50 = vsel %vm262_vm3, %v481_v49, 0 }
 0x267   :  { %v183_v21 = vpop.f32.mrb[0].mxu1 }
 0x268   :  { %v1207_v22 = vpop.f32.mrb[1].mxu1  ;;  %v237_v23 = vsel %vm142_vm2, %v183_v21, -inf }
 0x269   :  { %238 = vmax.xlane.f32.xlu1 %v237_v23  ;;  %v186_v24 = vpop.f32.mrb[2].mxu1 }
 0x26a   :  { %v1208_v25 = vpop.f32.mrb[3].mxu1 }
 0x26b   :  { %v231_v26 = vpop.f32.mrb[4].mxu0 }
 0x26c   :  { %v1213_v27 = vpop.f32.mrb[5].mxu0  ;;  %v240_v28 = vsel %vm142_vm2, %v231_v26, -inf }
 0x26d   :  { %241 = vmax.xlane.f32.xlu1 %v240_v28  ;;  %v234_v29 = vpop.f32.mrb[6].mxu0 }
 0x26e   :  { %v1214_v30 = vpop.f32.mrb[7].mxu0 }
 0x27e   :  { %306 = vrot.lane.b32.xlu1 %v1573_v14, %s1460_s28  ;;  %s1472_s28 = smov 80  }
 0x282   :  { %528 = vrot.lane.b32.xlu1 %v1573_v14, %s1471_s10 }
 0x2f6   :  { %v239_v32 = vpop.xlane.xlu1 %238 }
 0x2f7   :  { %v243_v33 = vsub.f32 %v183_v21, %v239_v32 }
 0x2f9   :  { %v245_v34 = vmul.f32 1.442695, %v243_v33 }
 0x2fa   :  { %v242_v35 = vpop.xlane.xlu1 %241 }
 0x2fb   :  { %1333 = vpow2.f32 %v245_v34  ;;  %v244_v37 = vsub.f32 %v231_v26, %v242_v35 }
 0x2fd   :  { %v247_v38 = vmul.f32 1.442695, %v244_v37 }
 0x2fe   :  { %v307_v39 = vpop.permute.xlu1 %306 }
 0x2ff   :  { %1335 = vpow2.f32 %v247_v38  ;;  %v312_v40 = vsel %vm262_vm3, %v307_v39, 0 }
 0x300   :  { %1222 = vmatpush3.bf16.msra.mxu0 %v312_v40 }
 0x301   :  { %1233 = vmatprep.subr.bf16.mxu0 %v1466_v0 }
 0x302   :  { %v529_v51 = vpop.permute.xlu1 %528 }
 0x303   :  { %v534_v52 = vsel %vm262_vm3, %v529_v51, 0 }
 0x305   :  { %v1606_v42 = vpop.eup %1333 }
 0x306   :  { %v255_v43 = vpack.c.bf16 %v1606_v42, %v1606_v42 }
 0x308   :  { %1218 = vmatmul.mubr.msk.bf16.vlgmr.msra.gmra.mrb[4].mxu1 %vm142_vm2, %v255_v43 }
 0x309   :  { %v1612_v46 = vpop.eup %1335  ;;  %1228 = vmatpush3.bf16.xpose.msra.mxu1 %v368_v45  ;;  %1229 = vmatprep.mubr.msk.bf16.mxu1 %vm1467_vm0, %v1466_v0 }
 0x30a   :  { %v256_v47 = vpack.c.bf16 %v1612_v46, %v1612_v46  ;;  %1239 = vmatprep.subr.bf16.mxu1 %v1466_v0 }
 0x30c   :  { %1224 = vmatmul.mubr.msk.bf16.vlgmr.msra.gmra.mrb[8].mxu0 %vm142_vm2, %v256_v47 }
 0x30d   :  { %1234 = vmatpush3.bf16.xpose.msra.mxu0 %v418_v48  ;;  %1235 = vmatprep.mubr.msk.bf16.mxu0 %vm1467_vm0, %v1466_v0 }
 0x30e   :  { %1245 = vmatprep.subr.bf16.mxu0 %v1466_v0 }
 0x310   :  { %1230 = vmatmul.mubr.msk.bf16.vlgmr.msra.gmra.mrb[8].mxu1 %vm142_vm2, %v361_v41 }
 0x311   :  { %1240 = vmatpush3.bf16.msra.mxu1 %v486_v50  ;;  %1241 = vmatprep.mubr.msk.bf16.mxu1 %vm1467_vm0, %v1466_v0 }
 0x312   :  { %1251 = vmatprep.subr.bf16.mxu1 %v1466_v0 }
 0x314   :  { %1236 = vmatmul.mubr.msk.bf16.vlgmr.msra.gmra.mrb[12].mxu0 %vm142_vm2, %v411_v44 }
 0x315   :  { %1246 = vmatpush3.bf16.msra.mxu0 %v534_v52  ;;  %1247 = vmatprep.mubr.msk.bf16.mxu0 %vm1467_vm0, %v1466_v0 }
 0x316   :  { %1257 = vmatprep.subr.bf16.mxu0 %v1466_v0 }
 0x3db   :  { %v1634_v53 = vpop.f32.mrb[4].mxu1 }
 0x3dc   :  { %v1219_v54 = vpop.f32.mrb[5].mxu1 }
 0x3dd   :  { %v303_v55 = vpop.f32.mrb[6].mxu1 }
 0x3de   :  { %v1220_v56 = vpop.f32.mrb[7].mxu1 }
 0x3df   :  { %v1636_v57 = vpop.f32.mrb[8].mxu0 }
 0x3e0   :  { %v1225_v58 = vpop.f32.mrb[9].mxu0 }
 0x3e1   :  { %v351_v59 = vpop.f32.mrb[10].mxu0 }
 0x3e2   :  { %v1226_v60 = vpop.f32.mrb[11].mxu0 }
 0x3e3   :  { %v404_v61 = vpop.f32.mrb[8].mxu1 }
 0x3e4   :  { %v1231_v62 = vpop.f32.mrb[9].mxu1  ;;  %v460_v63 = vsel %vm142_vm2, %v404_v61, -inf }
 0x3e5   :  { %v407_v1 = vpop.f32.mrb[10].mxu1  ;;  %461 = vmax.xlane.f32.xlu1 %v460_v63 }
 0x3e6   :  { %v1232_v2 = vpop.f32.mrb[11].mxu1 }
 0x3e7   :  { %v454_v3 = vpop.f32.mrb[12].mxu0 }
 0x3e8   :  { %v1237_v4 = vpop.f32.mrb[13].mxu0  ;;  %v463_v5 = vsel %vm142_vm2, %v454_v3, -inf }
 0x3e9   :  { %464 = vmax.xlane.f32.xlu0 %v463_v5  ;;  %v457_v6 = vpop.f32.mrb[14].mxu0 }
 0x3ea   :  { %v1238_v7 = vpop.f32.mrb[15].mxu0 }
 0x3f6   :  { %589 = vrot.lane.b32.xlu1 %v1570_v11, %s1472_s28 }
 0x3fa   :  { %587 = vrot.lane.b32.xlu1 %v1570_v11, %s1473_s11 }
 0x3fe   :  { %755 = vrot.lane.b32.xlu1 %v1573_v14, %s1474_s12 }
 0x3ff   :  { %639 = vrot.lane.b32.xlu0 %v1573_v14, %s1472_s28 }
 0x403   :  { %637 = vrot.lane.b32.xlu0 %v1573_v14, %s1473_s11 }
 0x407   :  { %707 = vrot.lane.b32.xlu0 %v1570_v11, %s1474_s12 }
 0x472   :  { %v462_v8 = vpop.xlane.xlu1 %461 }
 0x473   :  { %v466_v9 = vsub.f32 %v404_v61, %v462_v8 }
 0x475   :  { %v468_v10 = vmul.f32 1.442695, %v466_v9 }
 0x476   :  { %v465_v12 = vpop.xlane.xlu0 %464  ;;  %v590_v18 = vpop.permute.xlu1 %589 }
 0x477   :  { %1337 = vpow2.f32 %v468_v10  ;;  %v467_v13 = vsub.f32 %v454_v3, %v465_v12  ;;  %v595_v21 = vsel %vm142_vm2, %v590_v18, 0 }
 0x479   :  { %v470_v15 = vmul.f32 1.442695, %v467_v13 }
 0x47a   :  { %v640_v16 = vpop.permute.xlu0 %639  ;;  %v588_v24 = vpop.permute.xlu1 %587 }
 0x47b   :  { %1339 = vpow2.f32 %v470_v15  ;;  %v645_v25 = vsel %vm142_vm2, %v640_v16, 0 }
 0x47e   :  { %v638_v20 = vpop.permute.xlu0 %637  ;;  %v756_v28 = vpop.permute.xlu1 %755 }
 0x47f   :  { %v761_v29 = vsel %vm262_vm3, %v756_v28, 0 }
 0x481   :  { %v1646_v17 = vpop.eup %1337 }
 0x482   :  { %v478_v19 = vpack.c.bf16 %v1646_v17, %v1646_v17  ;;  %v708_v26 = vpop.permute.xlu0 %707 }
 0x483   :  { %v713_v27 = vsel %vm262_vm3, %v708_v26, 0 }
 0x484   :  { %1242 = vmatmul.mubr.msk.bf16.vlgmr.msra.gmra.mrb[12].mxu1 %vm142_vm2, %v478_v19 }
 0x485   :  { %v1652_v22 = vpop.eup %1339  ;;  %1252 = vmatpush3.bf16.xpose.msra.mxu1 %v595_v21  ;;  %1253 = vmatprep.mubr.msk.bf16.mxu1 %vm1467_vm0, %v1466_v0 }
 0x486   :  { %v479_v23 = vpack.c.bf16 %v1652_v22, %v1652_v22  ;;  %1263 = vmatprep.subr.bf16.mxu1 %v1466_v0 }
 0x488   :  { %1248 = vmatmul.mubr.msk.bf16.vlgmr.msra.gmra.mrb[16].mxu0 %vm142_vm2, %v479_v23 }
 0x489   :  { %1258 = vmatpush3.bf16.xpose.msra.mxu0 %v645_v25  ;;  %1259 = vmatprep.mubr.msk.bf16.mxu0 %vm1467_vm0, %v1466_v0 }
 0x48a   :  { %1269 = vmatprep.subr.bf16.mxu0 %v1466_v0 }
 0x48c   :  { %1254 = vmatmul.mubr.msk.bf16.vlgmr.msra.gmra.mrb[16].mxu1 %vm142_vm2, %v588_v24 }
 0x48d   :  { %1264 = vmatpush3.bf16.msra.mxu1 %v713_v27  ;;  %1265 = vmatprep.mubr.msk.bf16.mxu1 %vm1467_vm0, %v1466_v0  ;;  %v472_v27 = vsel %vm142_vm2, %v1646_v17, 0.0 }
 0x48e   :  { %1275 = vmatprep.subr.bf16.mxu1 %v1466_v0 }
 0x490   :  { %1260 = vmatmul.mubr.msk.bf16.vlgmr.msra.gmra.mrb[20].mxu0 %vm142_vm2, %v638_v20 }
 0x491   :  { %1270 = vmatpush3.bf16.msra.mxu0 %v761_v29  ;;  %1271 = vmatprep.mubr.msk.bf16.mxu0 %vm1467_vm0, %v1466_v0  ;;  %v475_v29 = vsel %vm142_vm2, %v1652_v22, 0.0 }
 0x492   :  { %1281 = vmatprep.subr.bf16.mxu0 %v1466_v0 }
 0x557   :  { %v1674_v30 = vpop.f32.mrb[12].mxu1 }
 0x558   :  { %v1243_v31 = vpop.f32.mrb[13].mxu1 }
 0x559   :  { %v525_v32 = vpop.f32.mrb[14].mxu1 }
 0x55a   :  { %v1244_v33 = vpop.f32.mrb[15].mxu1 }
 0x55b   :  { %v1676_v34 = vpop.f32.mrb[16].mxu0 }
 0x55c   :  { %v1249_v35 = vpop.f32.mrb[17].mxu0 }
 0x55d   :  { %v573_v36 = vpop.f32.mrb[18].mxu0 }
 0x55e   :  { %v1250_v37 = vpop.f32.mrb[19].mxu0 }
 0x55f   :  { %v631_v38 = vpop.f32.mrb[16].mxu1 }
 0x560   :  { %v1255_v39 = vpop.f32.mrb[17].mxu1  ;;  %v687_v40 = vsel %vm142_vm2, %v631_v38, -inf }
 0x561   :  { %688 = vmax.xlane.f32.xlu1 %v687_v40  ;;  %v634_v41 = vpop.f32.mrb[18].mxu1 }
 0x562   :  { %v1256_v43 = vpop.f32.mrb[19].mxu1 }
 0x563   :  { %v681_v44 = vpop.f32.mrb[20].mxu0 }
 0x564   :  { %v1261_v45 = vpop.f32.mrb[21].mxu0  ;;  %v690_v47 = vsel %vm142_vm2, %v681_v44, -inf }
 0x565   :  { %691 = vmax.xlane.f32.xlu0 %v690_v47  ;;  %v684_v48 = vpop.f32.mrb[22].mxu0 }
 0x566   :  { %v1262_v49 = vpop.f32.mrb[23].mxu0  ;;  %v252_v48 = vsel %vm142_vm2, %v1612_v46, 0.0 }
 0x572   :  { %816 = vrot.lane.b32.xlu1 %v1570_v11, %s1475_s13 }
 0x576   :  { %814 = vrot.lane.b32.xlu1 %v1570_v11, %s1476_s14 }
 0x57b   :  { %866 = vrot.lane.b32.xlu0 %v1573_v14, %s1475_s13 }
 0x57f   :  { %864 = vrot.lane.b32.xlu0 %v1573_v14, %s1476_s14 }
 0x5ee   :  { %v689_v50 = vpop.xlane.xlu1 %688 }
 0x5ef   :  { %v693_v51 = vsub.f32 %v631_v38, %v689_v50 }
 0x5f1   :  { %v695_v52 = vmul.f32 1.442695, %v693_v51 }
 0x5f2   :  { %v692_v54 = vpop.xlane.xlu0 %691  ;;  %v817_v59 = vpop.permute.xlu1 %816 }
 0x5f3   :  { %1341 = vpow2.f32 %v695_v52  ;;  %v694_v55 = vsub.f32 %v681_v44, %v692_v54  ;;  %v822_v61 = vsel %vm142_vm2, %v817_v59, 0  ;;  %v249_v44 = vsel %vm142_vm2, %v1606_v42, 0.0 }
 0x5f5   :  { %v697_v56 = vmul.f32 1.442695, %v694_v55 }
 0x5f6   :  { %v867_v63 = vpop.permute.xlu0 %866  ;;  %v815_v3 = vpop.permute.xlu1 %814 }
 0x5f7   :  { %1343 = vpow2.f32 %v697_v56  ;;  %v872_v2 = vsel %vm142_vm2, %v867_v63, 0 }
 0x5fa   :  { %v865_v4 = vpop.permute.xlu0 %864 }
 0x5fd   :  { %v1342_v58 = vpop.eup %1341 }
 0x5fe   :  { %v705_v60 = vpack.c.bf16 %v1342_v58, %v1342_v58  ;;  %v699_v31 = vsel %vm142_vm2, %v1342_v58, 0.0 }
 0x600   :  { %1266 = vmatmul.mubr.msk.bf16.vlgmr.msra.gmra.mrb[20].mxu1 %vm142_vm2, %v705_v60 }
 0x601   :  { %v1344_v62 = vpop.eup %1343  ;;  %1276 = vmatpush3.bf16.xpose.msra.mxu1 %v822_v61  ;;  %1277 = vmatprep.mubr.msk.bf16.mxu1 %vm1467_vm0, %v1466_v0 }
 0x602   :  { %v706_v1 = vpack.c.bf16 %v1344_v62, %v1344_v62  ;;  %1287 = vmatprep.subr.bf16.mxu1 %v1466_v0  ;;  %v702_v28 = vsel %vm142_vm2, %v1344_v62, 0.0 }
 0x604   :  { %1272 = vmatmul.mubr.msk.bf16.vlgmr.msra.gmra.mrb[24].mxu0 %vm142_vm2, %v706_v1 }
 0x605   :  { %1282 = vmatpush3.bf16.xpose.msra.mxu0 %v872_v2  ;;  %1283 = vmatprep.mubr.msk.bf16.mxu0 %vm1467_vm0, %v1466_v0 }
 0x606   :  { %1293 = vmatprep.subr.bf16.mxu0 %v1466_v0 }
 0x608   :  { %1278 = vmatmul.mubr.msk.bf16.vlgmr.msra.gmra.mrb[24].mxu1 %vm142_vm2, %v815_v3 }
 0x609   :  { %1289 = vmatprep.mubr.msk.bf16.mxu1 %vm1467_vm0, %v1466_v0 }
 0x60c   :  { %1284 = vmatmul.mubr.msk.bf16.vlgmr.msra.gmra.mrb[28].mxu0 %vm142_vm2, %v865_v4 }
 0x60d   :  { %1295 = vmatprep.mubr.msk.bf16.mxu0 %vm1467_vm0, %v1466_v0 }
 0x6d3   :  { %v1700_v5 = vpop.f32.mrb[20].mxu1 }
 0x6d4   :  { %v1267_v6 = vpop.f32.mrb[21].mxu1 }
 0x6d5   :  { %v752_v7 = vpop.f32.mrb[22].mxu1 }
 0x6d6   :  { %v1268_v8 = vpop.f32.mrb[23].mxu1 }
 0x6d7   :  { %v1702_v9 = vpop.f32.mrb[24].mxu0 }
 0x6d8   :  { %v1273_v10 = vpop.f32.mrb[25].mxu0 }
 0x6d9   :  { %v800_v12 = vpop.f32.mrb[26].mxu0  ;;  %v1332_v10 = vld [vmem:[#allocation8 + $0x8] sm:$0xff]  }
 0x6da   :  { %v1274_v13 = vpop.f32.mrb[27].mxu0 }
 0x6db   :  { %v858_v15 = vpop.f32.mrb[24].mxu1 }
 0x6dc   :  { %v1279_v16 = vpop.f32.mrb[25].mxu1  ;;  %v914_v18 = vsel %vm142_vm2, %v858_v15, -inf }
 0x6dd   :  { %915 = vmax.xlane.f32.xlu1 %v914_v18  ;;  %v861_v19 = vpop.f32.mrb[26].mxu1 }
 0x6de   :  { %v1280_v20 = vpop.f32.mrb[27].mxu1 }
 0x6df   :  { %v908_v21 = vpop.f32.mrb[28].mxu0 }
 0x6e0   :  { %v1285_v23 = vpop.f32.mrb[29].mxu0  ;;  %v917_v24 = vsel %vm142_vm2, %v908_v21, -inf }
 0x6e1   :  { %918 = vmax.xlane.f32.xlu0 %v917_v24  ;;  %v911_v25 = vpop.f32.mrb[30].mxu0 }
 0x6e2   :  { %v1286_v26 = vpop.f32.mrb[31].mxu0 }
 0x6ee   :  { %982 = vrot.lane.b32.xlu1 %v1573_v14, %s1477_s15 }
 0x6f7   :  { %934 = vrot.lane.b32.xlu0 %v1570_v11, %s1477_s15 }
 0x712   :  { %473 = vadd.xlane.f32.xlu1 %v472_v27  ;;  %v1151_v27 = vld [vmem:[%s1761_s4] ss:$0 sm:$0xff] }
 0x716   :  { %703 = vadd.xlane.f32.xlu1 %v702_v28  ;;  %476 = vadd.xlane.f32.xlu0 %v475_v29 }
 0x71a   :  { %700 = vadd.xlane.f32.xlu0 %v699_v31 }
 0x76a   :  { %v916_v32 = vpop.xlane.xlu1 %915 }
 0x76b   :  { %v920_v33 = vsub.f32 %v858_v15, %v916_v32 }
 0x76d   :  { %v922_v35 = vmul.f32 1.442695, %v920_v33 }
 0x76e   :  { %v983_v14 = vpop.permute.xlu1 %982  ;;  %v919_v36 = vpop.xlane.xlu0 %918 }
 0x76f   :  { %1345 = vpow2.f32 %v922_v35  ;;  %v988_v11 = vsel %vm262_vm3, %v983_v14, 0  ;;  %v921_v17 = vsub.f32 %v908_v21, %v919_v36 }
 0x770   :  { %1294 = vmatpush3.bf16.msra.mxu0 %v988_v11 }
 0x771   :  { %v924_v37 = vmul.f32 1.442695, %v921_v17 }
 0x772   :  { %v935_v38 = vpop.permute.xlu0 %934 }
 0x773   :  { %1347 = vpow2.f32 %v924_v37  ;;  %v940_v22 = vsel %vm262_vm3, %v935_v38, 0 }
 0x774   :  { %1288 = vmatpush3.bf16.msra.mxu1 %v940_v22 }
 0x775   :  { %1299 = vmatprep.subr.bf16.mxu1 %v1466_v0 }
 0x779   :  { %v1346_v39 = vpop.eup %1345 }
 0x77a   :  { %v926_v40 = vsel %vm142_vm2, %v1346_v39, 0.0  ;;  %v932_v41 = vpack.c.bf16 %v1346_v39, %v1346_v39 }
 0x77b   :  { %927 = vadd.xlane.f32.xlu0 %v926_v40 }
 0x77c   :  { %1290 = vmatmul.mubr.msk.bf16.vlgmr.msra.gmra.mrb[28].mxu1 %vm142_vm2, %v932_v41 }
 0x77d   :  { %v1348_v43 = vpop.eup %1347  ;;  %1303 = vmatprep.mubr.msk.bf16.mxu1 %vm1467_vm0, %v1466_v0 }
 0x77e   :  { %v929_v45 = vsel %vm142_vm2, %v1348_v43, 0.0  ;;  %v933_v47 = vpack.c.bf16 %v1348_v43, %v1348_v43 }
 0x77f   :  { %250 = vadd.xlane.f32.xlu0 %v249_v44  ;;  %930 = vadd.xlane.f32.xlu1 %v929_v45 }
 0x780   :  { %1296 = vmatmul.mubr.msk.bf16.vlgmr.msra.gmra.mrb[32].mxu0 %vm142_vm2, %v933_v47 }
 0x783   :  { %253 = vadd.xlane.f32.xlu1 %v252_v48 }
 0x79f   :  { %v474_v49 = vpop.xlane.xlu1 %473 }
 0x7a0   :  { %1349 = vrcp.f32 %v474_v49 }
 0x7a3   :  { %v704_v50 = vpop.xlane.xlu1 %703  ;;  %v477_v51 = vpop.xlane.xlu0 %476 }
 0x7a4   :  { %1351 = vrcp.f32 %v477_v51 }
 0x7a5   :  { %1353 = vrcp.f32 %v704_v50 }
 0x7a7   :  { %v701_v52 = vpop.xlane.xlu0 %700 }
 0x7a8   :  { %1355 = vrcp.f32 %v701_v52 }
 0x7aa   :  { %v1350_v42 = vpop.eup %1349 }
 0x7ab   :  { %v578_v56 = vmul.f32 %v1350_v42, %v1674_v30 }
 0x7ae   :  { %v1352_v54 = vpop.eup %1351 }
 0x7af   :  { %v1354_v55 = vpop.eup %1353  ;;  %v579_v58 = vmul.f32 %v1352_v54, %v1676_v34 }
 0x7b0   :  { %v806_v61 = vmul.f32 %v1354_v55, %v1702_v9  ;;  %v1331_v9 = vld [vmem:[#allocation8] sm:$0xff]  }
 0x7b1   :  { %v580_v60 = vpack.c.bf16 %v579_v58, %v578_v56  ;;  %1300 = vmatpush3.bf16.msra.mxu1 %v1331_v9 }
 0x7b2   :  { %v1356_v59 = vpop.eup %1355  ;;  %1301 = vmatprep.subr.bf16.mxu1 %v1466_v0 }
 0x7b3   :  { %v805_v46 = vmul.f32 %v1356_v59, %v1700_v5  ;;  %582 = vrot.lane.b32.xlu0 %v580_v60, %s1464_s17 }
 0x7b5   :  { %v807_v62 = vpack.c.bf16 %v806_v61, %v805_v46  ;;  %1302 = vmatpush3.bf16.msra.mxu1 %v1332_v10 }
 0x7b7   :  { %809 = vrot.lane.b32.xlu1 %v807_v62, %s1478_s16 }
 0x808   :  { %v928_v63 = vpop.xlane.xlu0 %927 }
 0x80c   :  { %v931_v1 = vpop.xlane.xlu1 %930  ;;  %v251_v2 = vpop.xlane.xlu0 %250 }
 0x80d   :  { %1357 = vrcp.f32 %v251_v2 }
 0x810   :  { %v254_v3 = vpop.xlane.xlu1 %253 }
 0x811   :  { %1359 = vrcp.f32 %v254_v3 }
 0x812   :  { %1361 = vrcp.f32 %v928_v63 }
 0x813   :  { %1363 = vrcp.f32 %v931_v1 }
 0x817   :  { %v1358_v30 = vpop.eup %1357 }
 0x818   :  { %v356_v34 = vmul.f32 %v1358_v30, %v1634_v53 }
 0x81b   :  { %v1360_v4 = vpop.eup %1359 }
 0x81c   :  { %v357_v6 = vmul.f32 %v1360_v4, %v1636_v57  ;;  %v1362_v57 = vpop.eup %1361 }
 0x81d   :  { %v1364_v16 = vpop.eup %1363 }
 0x81e   :  { %v358_v5 = vpack.c.bf16 %v357_v6, %v356_v34 }
 0x820   :  { %359 = vst.msk [vmem:[#allocation2] sm:$0xff] %vm142_vm2, %v358_v5 }
 0x825   :  { %v583_v7 = vpop.permute.xlu0 %582 }
 0x826   :  { %586 = vst.msk [vmem:[#allocation2] sm:$0xff] %vm585_vm4, %v583_v7 }
 0x829   :  { %v810_v8 = vpop.permute.xlu1 %809 }
 0x82a   :  { %813 = vst.msk [vmem:[#allocation2] sm:$0xff] %vm812_vm5, %v810_v8 }
 0x84f   :  { %v976_v12 = vpop.f32.mrb[28].mxu1 }
 0x850   :  { %v1291_v53 = vpop.f32.mrb[29].mxu1  ;;  %v1032_v19 = vmul.f32 %v1362_v57, %v976_v12 }
 0x851   :  { %v979_v13 = vpop.f32.mrb[30].mxu1 }
 0x852   :  { %v1292_v15 = vpop.f32.mrb[31].mxu1 }
 0x853   :  { %v1024_v18 = vpop.f32.mrb[32].mxu0 }
 0x854   :  { %v1033_v20 = vmul.f32 %v1364_v16, %v1024_v18  ;;  %v1297_v21 = vpop.f32.mrb[33].mxu0 }
 0x855   :  { %v1027_v23 = vpop.f32.mrb[34].mxu0 }
 0x856   :  { %v1034_v24 = vpack.c.bf16 %v1033_v20, %v1032_v19  ;;  %v1298_v25 = vpop.f32.mrb[35].mxu0 }
 0x858   :  { %1036 = vrot.lane.b32.xlu1 %v1034_v24, %s1479_s18 }
 0x8ca   :  { %v1037_v26 = vpop.permute.xlu1 %1036 }
 0x8cb   :  { %1040 = vst.msk [vmem:[#allocation2] sm:$0xff] %vm1039_vm6, %v1037_v26 }
 0x8d2   :  { %v1041_v0 = vld [vmem:[#allocation2] sm:$0xff] }
 0x8d3   :  { %1304 = vmatmul.mubr.msk.bf16.vlgmr.msra.gmra.mrb[32].mxu1 %vm89_vm1, %v1041_v0 }
 0x9a6   :  { %v1102_v28 = vpop.f32.mrb[32].mxu1 }
 0x9a7   :  { %v1103_v29 = vadd.f32 %v1151_v27, %v1102_v28  ;;  %v1305_v31 = vpop.f32.mrb[33].mxu1 }
 0x9a8   :  { %v1105_v32 = vpop.f32.mrb[34].mxu1 }
 0x9a9   :  { %1109 = vst.msk [vmem:[#allocation9] sm:$0xff] %vm89_vm1, %v1103_v29  ;;  %v1106_v33 = vadd.f32 %v1151_v27, %v1105_v32  ;;  %v1306_v35 = vpop.f32.mrb[35].mxu1 }
 0x9ab   :  { %1110 = vst.msk [vmem:[#allocation9 + $0x8] sm:$0xff] %vm89_vm1, %v1106_v33 }
 0x9ac   :  { %1442 = shalt.err (!%p1439_p0)
}
 0x9ad   :  { %s1443_s25 = scalar_lea.hbm %s1762_s5, 256 }
 0x9ae   :  { %p1444_p1 = scmp.ne.s32.totalorder %s1762_s5, %s1443_s25  ;;  %p1447_p2 = scmp.lt.u32.totalorder %s1443_s25, %s1762_s5 }
 0x9b0   :  { %p1449_p3 = pnand %p1447_p2, %p1444_p1 }
 0x9b2   :  { %1452 = shalt.err (!%p1449_p3)
}
 0x9b3   :  { %1122 = dma.vmem_to_hbm [thread:$0]  %s1117_s22, 256, %s1762_s5, [#allocation5], %s1463_s1, %s1463_s1, %s1464_s17  }
 0x9b4   :  { %1457 = dma.done.wait [#allocation5], 256  }
 0x9b5   :  { %1458 = vsyncadd [#allocation5], 4294967040 }
 0x9b6   :  { %1126 = vsyncpa [#allocation4], 1 }
 0x9b7   :  { %1127 = vsyncpa [#allocation7], 1 }
 0x9b8   :  { %1128 = vsyncpa [#allocation5], 1 }

// kernel: tpu_custom_call.1
= control target key start
LH: loop header
LB: loop body
LE: loop exit
PB: predicated region body
PF: predicated region fallthrough
CT: control target
= control target key end

     0   :  { %10 = vsyncpa [#allocation4], 0  ;;  %s1757_s0 = inlined_call_operand.hbm [shape: f32[2,8,32], index: 0, kind: input, shape index: {}]   ;;  %s1758_s1 = inlined_call_operand.hbm [shape: bf16[32,96], index: 1, kind: input, shape index: {}]   ;;  %s1759_s2 = inlined_call_operand.vmem [shape: f32[1,96], index: 2, kind: input, shape index: {}]   ;;  %s1760_s3 = inlined_call_operand.hbm [shape: bf16[32,32], index: 3, kind: input, shape index: {}]   ;;  %s1761_s4 = inlined_call_operand.vmem [shape: f32[1,32], index: 4, kind: input, shape index: {}]   ;;  %s1762_s5 = inlined_call_operand.hbm [shape: f32[2,8,32], index: 5, kind: output, shape index: {}]  }
   0x1   :  { %11 = vsyncpa [#allocation7], 0 }
   0x2   :  { %12 = vsyncpa [#allocation5], 0  ;;  %s1459_s18 = smov [#allocation6]   ;;  %s1365_s22 = scalar_lea.hbm %s1758_s1, 256 }
   0x3   :  { %s30_s19 = sshll.u32 %s1459_s18, 4  ;;  %p1366_p0 = scmp.ne.s32.totalorder %s1758_s1, %s1365_s22  ;;  %s31_s19 = int_to_ptr.vmem [resolvable:$true] %s30_s19 }
   0x4   :  { %p1369_p1 = scmp.lt.u32.totalorder %s1365_s22, %s1758_s1 }
   0x6   :  { %p1371_p2 = pnand %p1369_p1, %p1366_p0 }
   0x8   :  { %1374 = shalt.err (!%p1371_p2)
}
   0x9   :  { %s1375_s27 = scalar_lea.vmem %s31_s19, 256  ;;  %p1380_p4 = scmp.lt.s32.totalorder %s31_s19, %s31_s19 }
   0xa   :  { %p1376_p3 = scmp.ne.s32.totalorder %s31_s19, %s1375_s27  ;;  %p1381_p5 = scmp.lt.s32.totalorder %s1375_s27, %s1375_s27 }
   0xc   :  { %p1382_p6 = por %p1381_p5, %p1380_p4 }
   0xe   :  { %p1383_p7 = pnand %p1382_p6, %p1376_p3 }
  0x10   :  { %1386 = shalt.err (!%p1383_p7)
}
  0x11   :  { %s1460_s28 = smov 64   ;;  %s1461_s29 = smov 4  }
  0x12   :  { %36 = dma.hbm_to_vmem [thread:$0]  %s1758_s1, 256, %s31_s19, [#allocation7], %s1460_s28, %s1460_s28, %s1461_s29  }
  0x13   :  { %s1462_s7 = smov [#allocation3]   ;;  %s1387_s11 = scalar_lea.hbm %s1757_s0, 256 }
  0x14   :  { %s18_s8 = sshll.u32 %s1462_s7, 4  ;;  %p1388_p8 = scmp.ne.s32.totalorder %s1757_s0, %s1387_s11  ;;  %s19_s8 = int_to_ptr.vmem [resolvable:$true] %s18_s8 }
  0x15   :  { %p1391_p9 = scmp.lt.u32.totalorder %s1387_s11, %s1757_s0 }
  0x17   :  { %p1393_p10 = pnand %p1391_p9, %p1388_p8 }
  0x19   :  { %1396 = shalt.err (!%p1393_p10)
}
  0x1a   :  { %s1397_s16 = scalar_lea.vmem %s19_s8, 256  ;;  %p1402_p12 = scmp.lt.s32.totalorder %s19_s8, %s19_s8 }
  0x1b   :  { %p1398_p11 = scmp.ne.s32.totalorder %s19_s8, %s1397_s16  ;;  %p1403_p13 = scmp.lt.s32.totalorder %s1397_s16, %s1397_s16 }
  0x1d   :  { %p1404_p0 = por %p1403_p13, %p1402_p12 }
  0x1f   :  { %p1405_p1 = pnand %p1404_p0, %p1398_p11 }
  0x21   :  { %1408 = shalt.err (!%p1405_p1)
}
  0x22   :  { %s1463_s1 = smov 128   ;;  %s1464_s17 = smov 8  }
  0x23   :  { %24 = dma.hbm_to_vmem [thread:$0]  %s1757_s0, 256, %s19_s8, [#allocation4], %s1463_s1, %s1463_s1, %s1464_s17  }
  0x24   :  { %s1465_s20 = smov [#allocation8]   ;;  %s1409_s24 = scalar_lea.hbm %s1760_s3, 256 }
  0x25   :  { %s44_s21 = sshll.u32 %s1465_s20, 4  ;;  %p1410_p2 = scmp.ne.s32.totalorder %s1760_s3, %s1409_s24  ;;  %s45_s21 = int_to_ptr.vmem [resolvable:$true] %s44_s21 }
  0x26   :  { %p1413_p3 = scmp.lt.u32.totalorder %s1409_s24, %s1760_s3 }
  0x28   :  { %p1415_p4 = pnand %p1413_p3, %p1410_p2 }
  0x2a   :  { %1418 = shalt.err (!%p1415_p4)
}
  0x2b   :  { %s1419_s6 = scalar_lea.vmem %s45_s21, 256  ;;  %p1424_p6 = scmp.lt.s32.totalorder %s45_s21, %s45_s21 }
  0x2c   :  { %p1420_p5 = scmp.ne.s32.totalorder %s45_s21, %s1419_s6  ;;  %p1425_p7 = scmp.lt.s32.totalorder %s1419_s6, %s1419_s6 }
  0x2e   :  { %p1426_p8 = por %p1425_p7, %p1424_p6 }
  0x30   :  { %p1427_p9 = pnand %p1426_p8, %p1420_p5 }
  0x32   :  { %1430 = shalt.err (!%p1427_p9)
}
  0x33   :  { %50 = dma.hbm_to_vmem [thread:$0]  %s1760_s3, 256, %s45_s21, [#allocation7], %s1460_s28, %s1460_s28, %s1461_s29  }
  0x34   :  { %1453 = dma.done.wait [#allocation4], 256  }
  0x35   :  { %1454 = vsyncadd [#allocation4], 4294967040 }
  0x36   :  { %1455 = dma.done.wait [#allocation7], 512  }
  0x37   :  { %1456 = vsyncadd [#allocation7], 4294966784  ;;  %v1466_v0 = vmov 0.0   ;;  %vm1467_vm0 = vmmov 0   ;;  %v1329_v1 = vld [vmem:[#allocation6] sm:$0xff]   ;;  %v1330_v2 = vld [vmem:[#allocation6 + $0x8] sm:$0xff]  }
  0x38   :  { %1195 = vmatprep.subr.bf16.mxu0 %v1466_v0  ;;  %1199 = vmatprep.mubr.msk.bf16.mxu0 %vm1467_vm0, %v1466_v0  ;;  %v63_v3 = vld [vmem:[#allocation3] sm:$0xff]  ;;  %v64_v4 = vld [vmem:[#allocation3 + $0x8] sm:$0xff]  ;;  %vm89_vm1 = vcmask 261120   ;;  %v1129_v6 = vld [vmem:[%s1759_s2] ss:$0 sm:$0xff]  ;;  %s1468_s8 = smov 96  }
  0x39   :  { %1203 = vmatprep.subr.bf16.mxu1 %v1466_v0  ;;  %1205 = vmatprep.mubr.msk.bf16.mxu1 %vm1467_vm0, %v1466_v0  ;;  %v65_v5 = vpack.c.bf16 %v64_v4, %v63_v3  ;;  %s1469_s9 = smov 88   ;;  %s1470_s2 = smov 120   ;;  %vm142_vm2 = vcmask 64512   ;;  %vm262_vm3 = vcmask 1043456   ;;  %vm585_vm4 = vcmask 130112  }
  0x3a   :  { %1196 = vmatpush3.bf16.msra.mxu0 %v1329_v1  ;;  %s1471_s10 = smov 56   ;;  %s1473_s11 = smov 112   ;;  %vm812_vm5 = vcmask 195712   ;;  %vm1039_vm6 = vcmask 261312  }
  0x3b   :  { %1197 = vmatprep.subr.bf16.mxu0 %v1466_v0  ;;  %s1474_s12 = smov 48   ;;  %s1475_s13 = smov 72  }
  0x3c   :  { %s1476_s14 = smov 104   ;;  %s1477_s15 = smov 40  }
  0x3d   :  { %s1478_s16 = smov 16   ;;  %s1479_s18 = smov 24  }
  0x3e   :  { %1198 = vmatpush3.bf16.msra.mxu0 %v1330_v2  ;;  %s1480_s21 = smov [#allocation9]  }
  0x3f   :  { %1209 = vmatprep.subr.bf16.mxu0 %v1466_v0  ;;  %s1116_s22 = sshll.u32 %s1480_s21, 4  ;;  %s1117_s22 = int_to_ptr.vmem [resolvable:$true] %s1116_s22 }
  0x40   :  { %s1431_s23 = scalar_lea.vmem %s1117_s22, 256  ;;  %p1436_p11 = scmp.lt.s32.totalorder %s1117_s22, %s1117_s22 }
  0x41   :  { %1200 = vmatmul.mubr.msk.bf16.vlgmr.msra.gmra.mrb[0].mxu0 %vm89_vm1, %v65_v5  ;;  %p1432_p10 = scmp.ne.s32.totalorder %s1117_s22, %s1431_s23  ;;  %p1437_p12 = scmp.lt.s32.totalorder %s1431_s23, %s1431_s23 }
  0x42   :  { %1211 = vmatprep.mubr.msk.bf16.mxu0 %vm1467_vm0, %v1466_v0 }
  0x43   :  { %p1438_p13 = por %p1437_p12, %p1436_p11 }
  0x45   :  { %p1439_p0 = pnand %p1438_p13, %p1432_p10 }
 0x114   :  { %v127_v7 = vpop.f32.mrb[0].mxu0 }
 0x115   :  { %v128_v8 = vadd.f32 %v1129_v6, %v127_v7  ;;  %v1201_v9 = vpop.f32.mrb[1].mxu0 }
 0x116   :  { %v130_v10 = vpop.f32.mrb[2].mxu0 }
 0x117   :  { %v1570_v11 = vpack.c.bf16 %v128_v8, %v128_v8  ;;  %v131_v12 = vadd.f32 %v1129_v6, %v130_v10  ;;  %v1202_v13 = vpop.f32.mrb[3].mxu0 }
 0x119   :  { %140 = vrot.lane.b32.xlu0 %v1570_v11, %s1468_s8  ;;  %v1573_v14 = vpack.c.bf16 %v131_v12, %v131_v12 }
 0x11d   :  { %189 = vrot.lane.b32.xlu0 %v1573_v14, %s1468_s8 }
 0x121   :  { %257 = vrot.lane.b32.xlu0 %v1570_v11, %s1460_s28 }
 0x125   :  { %362 = vrot.lane.b32.xlu0 %v1570_v11, %s1469_s9 }
 0x129   :  { %412 = vrot.lane.b32.xlu0 %v1573_v14, %s1469_s9 }
 0x12d   :  { %360 = vrot.lane.b32.xlu0 %v1570_v11, %s1470_s2 }
 0x131   :  { %410 = vrot.lane.b32.xlu0 %v1573_v14, %s1470_s2 }
 0x135   :  { %480 = vrot.lane.b32.xlu0 %v1570_v11, %s1471_s10 }
 0x18b   :  { %v141_v15 = vpop.permute.xlu0 %140 }
 0x18c   :  { %v147_v16 = vsel %vm142_vm2, %v141_v15, 0 }
 0x18d   :  { %1204 = vmatpush3.bf16.xpose.msra.mxu1 %v147_v16 }
 0x18e   :  { %1215 = vmatprep.subr.bf16.mxu1 %v1466_v0 }
 0x18f   :  { %v190_v17 = vpop.permute.xlu0 %189 }
 0x190   :  { %v195_v18 = vsel %vm142_vm2, %v190_v17, 0 }
 0x191   :  { %1210 = vmatpush3.bf16.xpose.msra.mxu0 %v195_v18 }
 0x192   :  { %1221 = vmatprep.subr.bf16.mxu0 %v1466_v0 }
 0x193   :  { %v258_v19 = vpop.permute.xlu0 %257 }
 0x194   :  { %v264_v20 = vsel %vm262_vm3, %v258_v19, 0  ;;  %1206 = vmatmul.mubr.msk.bf16.vlgmr.msra.gmra.mrb[0].mxu1 %vm142_vm2, %v1570_v11 }
 0x195   :  { %1216 = vmatpush3.bf16.msra.mxu1 %v264_v20  ;;  %1217 = vmatprep.mubr.msk.bf16.mxu1 %vm1467_vm0, %v1466_v0 }
 0x196   :  { %1227 = vmatprep.subr.bf16.mxu1 %v1466_v0 }
 0x197   :  { %v363_v31 = vpop.permute.xlu0 %362 }
 0x198   :  { %1212 = vmatmul.mubr.msk.bf16.vlgmr.msra.gmra.mrb[4].mxu0 %vm142_vm2, %v1573_v14  ;;  %v368_v45 = vsel %vm142_vm2, %v363_v31, 0 }
 0x199   :  { %1223 = vmatprep.mubr.msk.bf16.mxu0 %vm1467_vm0, %v1466_v0 }
 0x19b   :  { %v413_v36 = vpop.permute.xlu0 %412 }
 0x19c   :  { %v418_v48 = vsel %vm142_vm2, %v413_v36, 0 }
 0x19f   :  { %v361_v41 = vpop.permute.xlu0 %360 }
 0x1a3   :  { %v411_v44 = vpop.permute.xlu0 %410 }
 0x1a7   :  { %v481_v49 = vpop.permute.xlu0 %480 }
 0x1a8   :  { %v486_v50 = vsel %vm262_vm3, %v481_v49, 0 }
 0x267   :  { %v183_v21 = vpop.f32.mrb[0].mxu1 }
 0x268   :  { %v1207_v22 = vpop.f32.mrb[1].mxu1  ;;  %v237_v23 = vsel %vm142_vm2, %v183_v21, -inf }
 0x269   :  { %238 = vmax.xlane.f32.xlu1 %v237_v23  ;;  %v186_v24 = vpop.f32.mrb[2].mxu1 }
 0x26a   :  { %v1208_v25 = vpop.f32.mrb[3].mxu1 }
 0x26b   :  { %v231_v26 = vpop.f32.mrb[4].mxu0 }
 0x26c   :  { %v1213_v27 = vpop.f32.mrb[5].mxu0  ;;  %v240_v28 = vsel %vm142_vm2, %v231_v26, -inf }
 0x26d   :  { %241 = vmax.xlane.f32.xlu1 %v240_v28  ;;  %v234_v29 = vpop.f32.mrb[6].mxu0 }
 0x26e   :  { %v1214_v30 = vpop.f32.mrb[7].mxu0 }
 0x27e   :  { %306 = vrot.lane.b32.xlu1 %v1573_v14, %s1460_s28  ;;  %s1472_s28 = smov 80  }
 0x282   :  { %528 = vrot.lane.b32.xlu1 %v1573_v14, %s1471_s10 }
 0x2f6   :  { %v239_v32 = vpop.xlane.xlu1 %238 }
 0x2f7   :  { %v243_v33 = vsub.f32 %v183_v21, %v239_v32 }
 0x2f9   :  { %v245_v34 = vmul.f32 1.442695, %v243_v33 }
 0x2fa   :  { %v242_v35 = vpop.xlane.xlu1 %241 }
 0x2fb   :  { %1333 = vpow2.f32 %v245_v34  ;;  %v244_v37 = vsub.f32 %v231_v26, %v242_v35 }
 0x2fd   :  { %v247_v38 = vmul.f32 1.442695, %v244_v37 }
 0x2fe   :  { %v307_v39 = vpop.permute.xlu1 %306 }
 0x2ff   :  { %1335 = vpow2.f32 %v247_v38  ;;  %v312_v40 = vsel %vm262_vm3, %v307_v39, 0 }
 0x300   :  { %1222 = vmatpush3.bf16.msra.mxu0 %v312_v40 }
 0x301   :  { %1233 = vmatprep.subr.bf16.mxu0 %v1466_v0 }
 0x302   :  { %v529_v51 = vpop.permute.xlu1 %528 }
 0x303   :  { %v534_v52 = vsel %vm262_vm3, %v529_v51, 0 }
 0x305   :  { %v1606_v42 = vpop.eup %1333 }
 0x306   :  { %v255_v43 = vpack.c.bf16 %v1606_v42, %v1606_v42 }
 0x308   :  { %1218 = vmatmul.mubr.msk.bf16.vlgmr.msra.gmra.mrb[4].mxu1 %vm142_vm2, %v255_v43 }
 0x309   :  { %v1612_v46 = vpop.eup %1335  ;;  %1228 = vmatpush3.bf16.xpose.msra.mxu1 %v368_v45  ;;  %1229 = vmatprep.mubr.msk.bf16.mxu1 %vm1467_vm0, %v1466_v0 }
 0x30a   :  { %v256_v47 = vpack.c.bf16 %v1612_v46, %v1612_v46  ;;  %1239 = vmatprep.subr.bf16.mxu1 %v1466_v0 }
 0x30c   :  { %1224 = vmatmul.mubr.msk.bf16.vlgmr.msra.gmra.mrb[8].mxu0 %vm142_vm2, %v256_v47 }
 0x30d   :  { %1234 = vmatpush3.bf16.xpose.msra.mxu0 %v418_v48  ;;  %1235 = vmatprep.mubr.msk.bf16.mxu0 %vm1467_vm0, %v1466_v0 }
 0x30e   :  { %1245 = vmatprep.subr.bf16.mxu0 %v1466_v0 }
 0x310   :  { %1230 = vmatmul.mubr.msk.bf16.vlgmr.msra.gmra.mrb[8].mxu1 %vm142_vm2, %v361_v41 }
 0x311   :  { %1240 = vmatpush3.bf16.msra.mxu1 %v486_v50  ;;  %1241 = vmatprep.mubr.msk.bf16.mxu1 %vm1467_vm0, %v1466_v0 }
 0x312   :  { %1251 = vmatprep.subr.bf16.mxu1 %v1466_v0 }
 0x314   :  { %1236 = vmatmul.mubr.msk.bf16.vlgmr.msra.gmra.mrb[12].mxu0 %vm142_vm2, %v411_v44 }
 0x315   :  { %1246 = vmatpush3.bf16.msra.mxu0 %v534_v52  ;;  %1247 = vmatprep.mubr.msk.bf16.mxu0 %vm1467_vm0, %v1466_v0 }
 0x316   :  { %1257 = vmatprep.subr.bf16.mxu0 %v1466_v0 }
 0x3db   :  { %v1634_v53 = vpop.f32.mrb[4].mxu1 }
 0x3dc   :  { %v1219_v54 = vpop.f32.mrb[5].mxu1 }
 0x3dd   :  { %v303_v55 = vpop.f32.mrb[6].mxu1 }
 0x3de   :  { %v1220_v56 = vpop.f32.mrb[7].mxu1 }
 0x3df   :  { %v1636_v57 = vpop.f32.mrb[8].mxu0 }
 0x3e0   :  { %v1225_v58 = vpop.f32.mrb[9].mxu0 }
 0x3e1   :  { %v351_v59 = vpop.f32.mrb[10].mxu0 }
 0x3e2   :  { %v1226_v60 = vpop.f32.mrb[11].mxu0 }
 0x3e3   :  { %v404_v61 = vpop.f32.mrb[8].mxu1 }
 0x3e4   :  { %v1231_v62 = vpop.f32.mrb[9].mxu1  ;;  %v460_v63 = vsel %vm142_vm2, %v404_v61, -inf }
 0x3e5   :  { %v407_v1 = vpop.f32.mrb[10].mxu1  ;;  %461 = vmax.xlane.f32.xlu1 %v460_v63 }
 0x3e6   :  { %v1232_v2 = vpop.f32.mrb[11].mxu1 }
 0x3e7   :  { %v454_v3 = vpop.f32.mrb[12].mxu0 }
 0x3e8   :  { %v1237_v4 = vpop.f32.mrb[13].mxu0  ;;  %v463_v5 = vsel %vm142_vm2, %v454_v3, -inf }
 0x3e9   :  { %464 = vmax.xlane.f32.xlu0 %v463_v5  ;;  %v457_v6 = vpop.f32.mrb[14].mxu0 }
 0x3ea   :  { %v1238_v7 = vpop.f32.mrb[15].mxu0 }
 0x3f6   :  { %589 = vrot.lane.b32.xlu1 %v1570_v11, %s1472_s28 }
 0x3fa   :  { %587 = vrot.lane.b32.xlu1 %v1570_v11, %s1473_s11 }
 0x3fe   :  { %755 = vrot.lane.b32.xlu1 %v1573_v14, %s1474_s12 }
 0x3ff   :  { %639 = vrot.lane.b32.xlu0 %v1573_v14, %s1472_s28 }
 0x403   :  { %637 = vrot.lane.b32.xlu0 %v1573_v14, %s1473_s11 }
 0x407   :  { %707 = vrot.lane.b32.xlu0 %v1570_v11, %s1474_s12 }
 0x472   :  { %v462_v8 = vpop.xlane.xlu1 %461 }
 0x473   :  { %v466_v9 = vsub.f32 %v404_v61, %v462_v8 }
 0x475   :  { %v468_v10 = vmul.f32 1.442695, %v466_v9 }
 0x476   :  { %v465_v12 = vpop.xlane.xlu0 %464  ;;  %v590_v18 = vpop.permute.xlu1 %589 }
 0x477   :  { %1337 = vpow2.f32 %v468_v10  ;;  %v467_v13 = vsub.f32 %v454_v3, %v465_v12  ;;  %v595_v21 = vsel %vm142_vm2, %v590_v18, 0 }
 0x479   :  { %v470_v15 = vmul.f32 1.442695, %v467_v13 }
 0x47a   :  { %v640_v16 = vpop.permute.xlu0 %639  ;;  %v588_v24 = vpop.permute.xlu1 %587 }
 0x47b   :  { %1339 = vpow2.f32 %v470_v15  ;;  %v645_v25 = vsel %vm142_vm2, %v640_v16, 0 }
 0x47e   :  { %v638_v20 = vpop.permute.xlu0 %637  ;;  %v756_v28 = vpop.permute.xlu1 %755 }
 0x47f   :  { %v761_v29 = vsel %vm262_vm3, %v756_v28, 0 }
 0x481   :  { %v1646_v17 = vpop.eup %1337 }
 0x482   :  { %v478_v19 = vpack.c.bf16 %v1646_v17, %v1646_v17  ;;  %v708_v26 = vpop.permute.xlu0 %707 }
 0x483   :  { %v713_v27 = vsel %vm262_vm3, %v708_v26, 0 }
 0x484   :  { %1242 = vmatmul.mubr.msk.bf16.vlgmr.msra.gmra.mrb[12].mxu1 %vm142_vm2, %v478_v19 }
 0x485   :  { %v1652_v22 = vpop.eup %1339  ;;  %1252 = vmatpush3.bf16.xpose.msra.mxu1 %v595_v21  ;;  %1253 = vmatprep.mubr.msk.bf16.mxu1 %vm1467_vm0, %v1466_v0 }
 0x486   :  { %v479_v23 = vpack.c.bf16 %v1652_v22, %v1652_v22  ;;  %1263 = vmatprep.subr.bf16.mxu1 %v1466_v0 }
 0x488   :  { %1248 = vmatmul.mubr.msk.bf16.vlgmr.msra.gmra.mrb[16].mxu0 %vm142_vm2, %v479_v23 }
 0x489   :  { %1258 = vmatpush3.bf16.xpose.msra.mxu0 %v645_v25  ;;  %1259 = vmatprep.mubr.msk.bf16.mxu0 %vm1467_vm0, %v1466_v0 }
 0x48a   :  { %1269 = vmatprep.subr.bf16.mxu0 %v1466_v0 }
 0x48c   :  { %1254 = vmatmul.mubr.msk.bf16.vlgmr.msra.gmra.mrb[16].mxu1 %vm142_vm2, %v588_v24 }
 0x48d   :  { %1264 = vmatpush3.bf16.msra.mxu1 %v713_v27  ;;  %1265 = vmatprep.mubr.msk.bf16.mxu1 %vm1467_vm0, %v1466_v0  ;;  %v472_v27 = vsel %vm142_vm2, %v1646_v17, 0.0 }
 0x48e   :  { %1275 = vmatprep.subr.bf16.mxu1 %v1466_v0 }
 0x490   :  { %1260 = vmatmul.mubr.msk.bf16.vlgmr.msra.gmra.mrb[20].mxu0 %vm142_vm2, %v638_v20 }
 0x491   :  { %1270 = vmatpush3.bf16.msra.mxu0 %v761_v29  ;;  %1271 = vmatprep.mubr.msk.bf16.mxu0 %vm1467_vm0, %v1466_v0  ;;  %v475_v29 = vsel %vm142_vm2, %v1652_v22, 0.0 }
 0x492   :  { %1281 = vmatprep.subr.bf16.mxu0 %v1466_v0 }
 0x557   :  { %v1674_v30 = vpop.f32.mrb[12].mxu1 }
 0x558   :  { %v1243_v31 = vpop.f32.mrb[13].mxu1 }
 0x559   :  { %v525_v32 = vpop.f32.mrb[14].mxu1 }
 0x55a   :  { %v1244_v33 = vpop.f32.mrb[15].mxu1 }
 0x55b   :  { %v1676_v34 = vpop.f32.mrb[16].mxu0 }
 0x55c   :  { %v1249_v35 = vpop.f32.mrb[17].mxu0 }
 0x55d   :  { %v573_v36 = vpop.f32.mrb[18].mxu0 }
 0x55e   :  { %v1250_v37 = vpop.f32.mrb[19].mxu0 }
 0x55f   :  { %v631_v38 = vpop.f32.mrb[16].mxu1 }
 0x560   :  { %v1255_v39 = vpop.f32.mrb[17].mxu1  ;;  %v687_v40 = vsel %vm142_vm2, %v631_v38, -inf }
 0x561   :  { %688 = vmax.xlane.f32.xlu1 %v687_v40  ;;  %v634_v41 = vpop.f32.mrb[18].mxu1 }
 0x562   :  { %v1256_v43 = vpop.f32.mrb[19].mxu1 }
 0x563   :  { %v681_v44 = vpop.f32.mrb[20].mxu0 }
 0x564   :  { %v1261_v45 = vpop.f32.mrb[21].mxu0  ;;  %v690_v47 = vsel %vm142_vm2, %v681_v44, -inf }
 0x565   :  { %691 = vmax.xlane.f32.xlu0 %v690_v47  ;;  %v684_v48 = vpop.f32.mrb[22].mxu0 }
 0x566   :  { %v1262_v49 = vpop.f32.mrb[23].mxu0  ;;  %v252_v48 = vsel %vm142_vm2, %v1612_v46, 0.0 }
 0x572   :  { %816 = vrot.lane.b32.xlu1 %v1570_v11, %s1475_s13 }
 0x576   :  { %814 = vrot.lane.b32.xlu1 %v1570_v11, %s1476_s14 }
 0x57b   :  { %866 = vrot.lane.b32.xlu0 %v1573_v14, %s1475_s13 }
 0x57f   :  { %864 = vrot.lane.b32.xlu0 %v1573_v14, %s1476_s14 }
 0x5ee   :  { %v689_v50 = vpop.xlane.xlu1 %688 }
 0x5ef   :  { %v693_v51 = vsub.f32 %v631_v38, %v689_v50 }
 0x5f1   :  { %v695_v52 = vmul.f32 1.442695, %v693_v51 }
 0x5f2   :  { %v692_v54 = vpop.xlane.xlu0 %691  ;;  %v817_v59 = vpop.permute.xlu1 %816 }
 0x5f3   :  { %1341 = vpow2.f32 %v695_v52  ;;  %v694_v55 = vsub.f32 %v681_v44, %v692_v54  ;;  %v822_v61 = vsel %vm142_vm2, %v817_v59, 0  ;;  %v249_v44 = vsel %vm142_vm2, %v1606_v42, 0.0 }
 0x5f5   :  { %v697_v56 = vmul.f32 1.442695, %v694_v55 }
 0x5f6   :  { %v867_v63 = vpop.permute.xlu0 %866  ;;  %v815_v3 = vpop.permute.xlu1 %814 }
 0x5f7   :  { %1343 = vpow2.f32 %v697_v56  ;;  %v872_v2 = vsel %vm142_vm2, %v867_v63, 0 }
 0x5fa   :  { %v865_v4 = vpop.permute.xlu0 %864 }
 0x5fd   :  { %v1342_v58 = vpop.eup %1341 }
 0x5fe   :  { %v705_v60 = vpack.c.bf16 %v1342_v58, %v1342_v58  ;;  %v699_v31 = vsel %vm142_vm2, %v1342_v58, 0.0 }
 0x600   :  { %1266 = vmatmul.mubr.msk.bf16.vlgmr.msra.gmra.mrb[20].mxu1 %vm142_vm2, %v705_v60 }
 0x601   :  { %v1344_v62 = vpop.eup %1343  ;;  %1276 = vmatpush3.bf16.xpose.msra.mxu1 %v822_v61  ;;  %1277 = vmatprep.mubr.msk.bf16.mxu1 %vm1467_vm0, %v1466_v0 }
 0x602   :  { %v706_v1 = vpack.c.bf16 %v1344_v62, %v1344_v62  ;;  %1287 = vmatprep.subr.bf16.mxu1 %v1466_v0  ;;  %v702_v28 = vsel %vm142_vm2, %v1344_v62, 0.0 }
 0x604   :  { %1272 = vmatmul.mubr.msk.bf16.vlgmr.msra.gmra.mrb[24].mxu0 %vm142_vm2, %v706_v1 }
 0x605   :  { %1282 = vmatpush3.bf16.xpose.msra.mxu0 %v872_v2  ;;  %1283 = vmatprep.mubr.msk.bf16.mxu0 %vm1467_vm0, %v1466_v0 }
 0x606   :  { %1293 = vmatprep.subr.bf16.mxu0 %v1466_v0 }
 0x608   :  { %1278 = vmatmul.mubr.msk.bf16.vlgmr.msra.gmra.mrb[24].mxu1 %vm142_vm2, %v815_v3 }
 0x609   :  { %1289 = vmatprep.mubr.msk.bf16.mxu1 %vm1467_vm0, %v1466_v0 }
 0x60c   :  { %1284 = vmatmul.mubr.msk.bf16.vlgmr.msra.gmra.mrb[28].mxu0 %vm142_vm2, %v865_v4 }
 0x60d   :  { %1295 = vmatprep.mubr.msk.bf16.mxu0 %vm1467_vm0, %v1466_v0 }
 0x6d3   :  { %v1700_v5 = vpop.f32.mrb[20].mxu1 }
 0x6d4   :  { %v1267_v6 = vpop.f32.mrb[21].mxu1 }
 0x6d5   :  { %v752_v7 = vpop.f32.mrb[22].mxu1 }
 0x6d6   :  { %v1268_v8 = vpop.f32.mrb[23].mxu1 }
 0x6d7   :  { %v1702_v9 = vpop.f32.mrb[24].mxu0 }
 0x6d8   :  { %v1273_v10 = vpop.f32.mrb[25].mxu0 }
 0x6d9   :  { %v800_v12 = vpop.f32.mrb[26].mxu0  ;;  %v1332_v10 = vld [vmem:[#allocation8 + $0x8] sm:$0xff]  }
 0x6da   :  { %v1274_v13 = vpop.f32.mrb[27].mxu0 }
 0x6db   :  { %v858_v15 = vpop.f32.mrb[24].mxu1 }
 0x6dc   :  { %v1279_v16 = vpop.f32.mrb[25].mxu1  ;;  %v914_v18 = vsel %vm142_vm2, %v858_v15, -inf }
 0x6dd   :  { %915 = vmax.xlane.f32.xlu1 %v914_v18  ;;  %v861_v19 = vpop.f32.mrb[26].mxu1 }
 0x6de   :  { %v1280_v20 = vpop.f32.mrb[27].mxu1 }
 0x6df   :  { %v908_v21 = vpop.f32.mrb[28].mxu0 }
 0x6e0   :  { %v1285_v23 = vpop.f32.mrb[29].mxu0  ;;  %v917_v24 = vsel %vm142_vm2, %v908_v21, -inf }
 0x6e1   :  { %918 = vmax.xlane.f32.xlu0 %v917_v24  ;;  %v911_v25 = vpop.f32.mrb[30].mxu0 }
 0x6e2   :  { %v1286_v26 = vpop.f32.mrb[31].mxu0 }
 0x6ee   :  { %982 = vrot.lane.b32.xlu1 %v1573_v14, %s1477_s15 }
 0x6f7   :  { %934 = vrot.lane.b32.xlu0 %v1570_v11, %s1477_s15 }
 0x712   :  { %473 = vadd.xlane.f32.xlu1 %v472_v27  ;;  %v1151_v27 = vld [vmem:[%s1761_s4] ss:$0 sm:$0xff] }
 0x716   :  { %703 = vadd.xlane.f32.xlu1 %v702_v28  ;;  %476 = vadd.xlane.f32.xlu0 %v475_v29 }
 0x71a   :  { %700 = vadd.xlane.f32.xlu0 %v699_v31 }
 0x76a   :  { %v916_v32 = vpop.xlane.xlu1 %915 }
 0x76b   :  { %v920_v33 = vsub.f32 %v858_v15, %v916_v32 }
 0x76d   :  { %v922_v35 = vmul.f32 1.442695, %v920_v33 }
 0x76e   :  { %v983_v14 = vpop.permute.xlu1 %982  ;;  %v919_v36 = vpop.xlane.xlu0 %918 }
 0x76f   :  { %1345 = vpow2.f32 %v922_v35  ;;  %v988_v11 = vsel %vm262_vm3, %v983_v14, 0  ;;  %v921_v17 = vsub.f32 %v908_v21, %v919_v36 }
 0x770   :  { %1294 = vmatpush3.bf16.msra.mxu0 %v988_v11 }
 0x771   :  { %v924_v37 = vmul.f32 1.442695, %v921_v17 }
 0x772   :  { %v935_v38 = vpop.permute.xlu0 %934 }
 0x773   :  { %1347 = vpow2.f32 %v924_v37  ;;  %v940_v22 = vsel %vm262_vm3, %v935_v38, 0 }
 0x774   :  { %1288 = vmatpush3.bf16.msra.mxu1 %v940_v22 }
 0x775   :  { %1299 = vmatprep.subr.bf16.mxu1 %v1466_v0 }
 0x779   :  { %v1346_v39 = vpop.eup %1345 }
 0x77a   :  { %v926_v40 = vsel %vm142_vm2, %v1346_v39, 0.0  ;;  %v932_v41 = vpack.c.bf16 %v1346_v39, %v1346_v39 }
 0x77b   :  { %927 = vadd.xlane.f32.xlu0 %v926_v40 }
 0x77c   :  { %1290 = vmatmul.mubr.msk.bf16.vlgmr.msra.gmra.mrb[28].mxu1 %vm142_vm2, %v932_v41 }
 0x77d   :  { %v1348_v43 = vpop.eup %1347  ;;  %1303 = vmatprep.mubr.msk.bf16.mxu1 %vm1467_vm0, %v1466_v0 }
 0x77e   :  { %v929_v45 = vsel %vm142_vm2, %v1348_v43, 0.0  ;;  %v933_v47 = vpack.c.bf16 %v1348_v43, %v1348_v43 }
 0x77f   :  { %250 = vadd.xlane.f32.xlu0 %v249_v44  ;;  %930 = vadd.xlane.f32.xlu1 %v929_v45 }
 0x780   :  { %1296 = vmatmul.mubr.msk.bf16.vlgmr.msra.gmra.mrb[32].mxu0 %vm142_vm2, %v933_v47 }
 0x783   :  { %253 = vadd.xlane.f32.xlu1 %v252_v48 }
 0x79f   :  { %v474_v49 = vpop.xlane.xlu1 %473 }
 0x7a0   :  { %1349 = vrcp.f32 %v474_v49 }
 0x7a3   :  { %v704_v50 = vpop.xlane.xlu1 %703  ;;  %v477_v51 = vpop.xlane.xlu0 %476 }
 0x7a4   :  { %1351 = vrcp.f32 %v477_v51 }
 0x7a5   :  { %1353 = vrcp.f32 %v704_v50 }
 0x7a7   :  { %v701_v52 = vpop.xlane.xlu0 %700 }
 0x7a8   :  { %1355 = vrcp.f32 %v701_v52 }
 0x7aa   :  { %v1350_v42 = vpop.eup %1349 }
 0x7ab   :  { %v578_v56 = vmul.f32 %v1350_v42, %v1674_v30 }
 0x7ae   :  { %v1352_v54 = vpop.eup %1351 }
 0x7af   :  { %v1354_v55 = vpop.eup %1353  ;;  %v579_v58 = vmul.f32 %v1352_v54, %v1676_v34 }
 0x7b0   :  { %v806_v61 = vmul.f32 %v1354_v55, %v1702_v9  ;;  %v1331_v9 = vld [vmem:[#allocation8] sm:$0xff]  }
 0x7b1   :  { %v580_v60 = vpack.c.bf16 %v579_v58, %v578_v56  ;;  %1300 = vmatpush3.bf16.msra.mxu1 %v1331_v9 }
 0x7b2   :  { %v1356_v59 = vpop.eup %1355  ;;  %1301 = vmatprep.subr.bf16.mxu1 %v1466_v0 }
 0x7b3   :  { %v805_v46 = vmul.f32 %v1356_v59, %v1700_v5  ;;  %582 = vrot.lane.b32.xlu0 %v580_v60, %s1464_s17 }
 0x7b5   :  { %v807_v62 = vpack.c.bf16 %v806_v61, %v805_v46  ;;  %1302 = vmatpush3.bf16.msra.mxu1 %v1332_v10 }
 0x7b7   :  { %809 = vrot.lane.b32.xlu1 %v807_v62, %s1478_s16 }
 0x808   :  { %v928_v63 = vpop.xlane.xlu0 %927 }
 0x80c   :  { %v931_v1 = vpop.xlane.xlu1 %930  ;;  %v251_v2 = vpop.xlane.xlu0 %250 }
 0x80d   :  { %1357 = vrcp.f32 %v251_v2 }
 0x810   :  { %v254_v3 = vpop.xlane.xlu1 %253 }
 0x811   :  { %1359 = vrcp.f32 %v254_v3 }
 0x812   :  { %1361 = vrcp.f32 %v928_v63 }
 0x813   :  { %1363 = vrcp.f32 %v931_v1 }
 0x817   :  { %v1358_v30 = vpop.eup %1357 }
 0x818   :  { %v356_v34 = vmul.f32 %v1358_v30, %v1634_v53 }
 0x81b   :  { %v1360_v4 = vpop.eup %1359 }
 0x81c   :  { %v357_v6 = vmul.f32 %v1360_v4, %v1636_v57  ;;  %v1362_v57 = vpop.eup %1361 }
 0x81d   :  { %v1364_v16 = vpop.eup %1363 }
 0x81e   :  { %v358_v5 = vpack.c.bf16 %v357_v6, %v356_v34 }
 0x820   :  { %359 = vst.msk [vmem:[#allocation2] sm:$0xff] %vm142_vm2, %v358_v5 }
 0x825   :  { %v583_v7 = vpop.permute.xlu0 %582 }
 0x826   :  { %586 = vst.msk [vmem:[#allocation2] sm:$0xff] %vm585_vm4, %v583_v7 }
 0x829   :  { %v810_v8 = vpop.permute.xlu1 %809 }
 0x82a   :  { %813 = vst.msk [vmem:[#allocation2] sm:$0xff] %vm812_vm5, %v810_v8 }
 0x84f   :  { %v976_v12 = vpop.f32.mrb[28].mxu1 }
 0x850   :  { %v1291_v53 = vpop.f32.mrb[29].mxu1  ;;  %v1032_v19 = vmul.f32 %v1362_v57, %v976_v12 }
 0x851   :  { %v979_v13 = vpop.f32.mrb[30].mxu1 }
 0x852   :  { %v1292_v15 = vpop.f32.mrb[31].mxu1 }
 0x853   :  { %v1024_v18 = vpop.f32.mrb[32].mxu0 }
 0x854   :  { %v1033_v20 = vmul.f32 %v1364_v16, %v1024_v18  ;;  %v1297_v21 = vpop.f32.mrb[33].mxu0 }
 0x855   :  { %v1027_v23 = vpop.f32.mrb[34].mxu0 }
 0x856   :  { %v1034_v24 = vpack.c.bf16 %v1033_v20, %v1032_v19  ;;  %v1298_v25 = vpop.f32.mrb[35].mxu0 }
 0x858   :  { %1036 = vrot.lane.b32.xlu1 %v1034_v24, %s1479_s18 }
 0x8ca   :  { %v1037_v26 = vpop.permute.xlu1 %1036 }
 0x8cb   :  { %1040 = vst.msk [vmem:[#allocation2] sm:$0xff] %vm1039_vm6, %v1037_v26 }
 0x8d2   :  { %v1041_v0 = vld [vmem:[#allocation2] sm:$0xff] }
 0x8d3   :  { %1304 = vmatmul.mubr.msk.bf16.vlgmr.msra.gmra.mrb[32].mxu1 %vm89_vm1, %v1041_v0 }
 0x9a6   :  { %v1102_v28 = vpop.f32.mrb[32].mxu1 }
 0x9a7   :  { %v1103_v29 = vadd.f32 %v1151_v27, %v1102_v28  ;;  %v1305_v31 = vpop.f32.mrb[33].mxu1 }
 0x9a8   :  { %v1105_v32 = vpop.f32.mrb[34].mxu1 }
 0x9a9   :  { %1109 = vst.msk [vmem:[#allocation9] sm:$0xff] %vm89_vm1, %v1103_v29  ;;  %v1106_v33 = vadd.f32 %v1151_v27, %v1105_v32  ;;  %v1306_v35 = vpop.f32.mrb[35].mxu1 }
 0x9ab   :  { %1110 = vst.msk [vmem:[#allocation9 + $0x8] sm:$0xff] %vm89_vm1, %v1106_v33 }
 0x9ac   :  { %1442 = shalt.err (!%p1439_p0)
}
 0x9ad   :  { %s1443_s25 = scalar_lea.hbm %s1762_s5, 256 }
 0x9ae   :  { %p1444_p1 = scmp.ne.s32.totalorder %s1762_s5, %s1443_s25  ;;  %p1447_p2 = scmp.lt.u32.totalorder %s1443_s25, %s1762_s5 }
 0x9b0   :  { %p1449_p3 = pnand %p1447_p2, %p1444_p1 }
 0x9b2   :  { %1452 = shalt.err (!%p1449_p3)
}
 0x9b3   :  { %1122 = dma.vmem_to_hbm [thread:$0]  %s1117_s22, 256, %s1762_s5, [#allocation5], %s1463_s1, %s1463_s1, %s1464_s17  }
 0x9b4   :  { %1457 = dma.done.wait [#allocation5], 256  }
 0x9b5   :  { %1458 = vsyncadd [#allocation5], 4294967040 }
 0x9b6   :  { %1126 = vsyncpa [#allocation4], 1 }
 0x9b7   :  { %1127 = vsyncpa [#allocation7], 1 }
 0x9b8   :  { %1128 = vsyncpa [#allocation5], 1 }

</bundles_post_ra>
